<compile_context>
chip_gen: v7x
topology: tpu7x:2x2x1
jax: 0.10.0
libtpu: 0.0.40
codegen_flags: <defaults>
</compile_context>

<pallas_src>
import math
from functools import partial

import jax
import jax.numpy as jnp
from jax.experimental import pallas as pl
from jax.experimental.pallas import tpu as pltpu


def _round_up(v, m):
    return ((v + m - 1) // m) * m


def _pick_row_tile(oh, wpp, target_rows=1024):
    """Largest divisor of OH whose tile is <= ~target pixel rows."""
    best = 1
    for t in range(1, oh + 1):
        if oh % t == 0 and t * wpp <= max(target_rows, wpp):
            best = t
    return best


# --------------------------- Pallas kernel ----------------------------------

def _encoder_block_kernel(xm_ref, xh_ref, w1_ref, b1_ref, w2_ref, b2_ref,
                          w3_ref, wid_ref, bout_ref, o_ref, xf_ref,
                          *, tr, wpp, cp, dp):
    """Fused EncoderBlock forward for one (batch, row-tile) grid step.

    xm_ref : (1, tr*wpp, 4*cp)  space-to-depth x, rows of this tile (+ pads)
    xh_ref : (1, wpp,   4*cp)   one halo space-to-depth row below the tile
    Layout of the last dim: 4 lane-blocks of cp channels, one per 2x2
    sub-position q = 2*sub_row + sub_col.  Channel cp-1 of each block is a
    pad-indicator: 1 on the conv zero-padding ring, 0 elsewhere; w1 maps it to
    -1e30 so the ReLU makes h1 exactly 0 on the padding ring.
    """
    body = tr * wpp
    nrows = xf_ref.shape[0]
    guard = nrows - body - wpp

    # assemble the (tr + 1) s2d-row window (+ zeroed guard rows) in VMEM
    xf_ref[pl.ds(0, body)] = xm_ref[0]
    xf_ref[pl.ds(body, wpp)] = xh_ref[0]
    xf_ref[pl.ds(body + wpp, guard)] = jnp.zeros((guard, 4 * cp), jnp.bfloat16)
    xf = xf_ref[...]                                   # (nrows, 4*cp) bf16

    # --- enc_layer 1: 1x1 conv (+ folded BN) + ReLU, per 2x2 sub-position ---
    h1 = []
    for q in range(4):
        hq = jnp.dot(xf[:, q * cp:(q + 1) * cp], w1_ref[...],
                     preferred_element_type=jnp.float32)
        h1.append(jnp.maximum(hq + b1_ref[...], 0.0).astype(jnp.bfloat16))

    # --- enc_layer 2: 3x3 / stride-2 conv (+ folded BN) + ReLU ---------------
    # 9 accumulated MXU dots over shifted in-VMEM views (no HBM im2col).
    # kernel tap index k -> (window shift, 2x2 sub-position) for pad=1/stride=2
    offs = ((0, 1), (1, 0), (1, 1))
    acc = jnp.zeros((body, dp), jnp.float32)
    for kh in range(3):
        dj, sr = offs[kh]
        for kw in range(3):
            dc, sc = offs[kw]
            s0 = dj * wpp + dc
            tap = h1[2 * sr + sc][s0:s0 + body]
            acc = acc + jnp.dot(tap, w2_ref[kh, kw],
                                preferred_element_type=jnp.float32)
    h2 = jnp.maximum(acc + b2_ref[...], 0.0).astype(jnp.bfloat16)

    # --- enc_layer 3 (zero_bn 1x1) + id path (AvgPool folded) + ReLU ---------
    xid = xf[wpp + 1:wpp + 1 + body]                   # x 2x2 blocks, (body, 4*cp)
    out = jnp.dot(h2, w3_ref[...], preferred_element_type=jnp.float32)
    out = out + jnp.dot(xid, wid_ref[...], preferred_element_type=jnp.float32)
    o_ref[0] = jnp.maximum(out + bout_ref[...], 0.0).astype(o_ref.dtype)


# --------------------------- parameter prep ----------------------------------

def _prepare_kernel_params(p, cp, dp, op):
    cin, chd = p["w1"].shape
    cout = p["w3"].shape[1]
    bf16 = jnp.bfloat16

    # fold BN scales into the conv weights, keep shifts as biases
    w1 = jnp.zeros((cp, dp), jnp.float32).at[:cin, :chd].set(p["w1"] * p["s1"])
    w1 = w1.at[cp - 1, :].set(-1e30)                 # pad-indicator channel
    w2 = jnp.zeros((3, 3, dp, dp), jnp.float32).at[:, :, :chd, :chd].set(
        p["w2"] * p["s2"].reshape(1, 1, 1, -1))
    w3 = jnp.zeros((dp, op), jnp.float32).at[:chd, :cout].set(p["w3"] * p["s3"])
    wid = jnp.zeros((cp, op), jnp.float32).at[:cin, :cout].set(
        p["wid"] * p["sid"] * 0.25)                  # AvgPool 1/4 folded in
    wid4 = jnp.tile(wid, (4, 1))                     # (4*cp, op)

    b1 = jnp.zeros((1, dp), jnp.float32).at[:, :chd].set(p["b1"])
    b2 = jnp.zeros((1, dp), jnp.float32).at[:, :chd].set(p["b2"])
    bout = jnp.zeros((1, op), jnp.float32).at[:, :cout].set(p["b3"] + p["bid"])

    return dict(w1=w1.astype(bf16), b1=b1, w2=w2.astype(bf16), b2=b2,
                w3=w3.astype(bf16), wid4=wid4.astype(bf16), bout=bout)


# --------------------------- wrapper -----------------------------------------

def encoder_block_forward(x_nchw, params, *, row_tile=None):
    n, cin, h, w = x_nchw.shape
    assert h % 2 == 0 and w % 2 == 0
    oh, ow = h // 2, w // 2
    chd = params["w1"].shape[1]
    cout = params["w3"].shape[1]

    cp = _round_up(cin + 1, 128)        # +1 spare channel for the pad indicator
    dp = _round_up(chd, 128)
    op = _round_up(cout, 128)
    wpp = _round_up(ow + 1, 16)         # padded s2d width (left pad + align)

    tr = _pick_row_tile(oh, wpp) if row_tile is None else row_tile
    assert oh % tr == 0

    # ---- prep: NHWC, lane pad, 2x2 space-to-depth, halo pad, pad indicator --
    x = jnp.transpose(x_nchw, (0, 2, 3, 1)).astype(jnp.float32)
    x = jnp.pad(x, ((0, 0), (0, 0), (0, 0), (0, cp - cin))).astype(jnp.bfloat16)
    xs = x.reshape(n, oh, 2, ow, 2, cp).transpose(0, 1, 3, 2, 4, 5)
    xs = xs.reshape(n, oh, ow, 4 * cp)
    xs = jnp.pad(xs, ((0, 0), (1, 0), (1, wpp - (ow + 1)), (0, 0)))
    # pad-indicator channel on the 3x3-conv zero-padding ring (top row / left col)
    ind_lane = jnp.zeros((4 * cp,), jnp.bfloat16).at[cp - 1::cp].set(1.0)
    ring = (jnp.arange(oh + 1)[:, None] == 0) | (jnp.arange(wpp)[None, :] == 0)
    xs = xs + ring[None, :, :, None].astype(jnp.bfloat16) * ind_lane
    xs = xs.reshape(n, (oh + 1) * wpp, 4 * cp)          # flat pixel-major

    kp = _prepare_kernel_params(params, cp, dp, op)

    body = tr * wpp
    steps = n * (oh // tr)
    rows_k = (tr + 1) * wpp + 8
    macs = steps * (4 * rows_k * cp * dp
                    + body * (9 * dp * dp + dp * op + 4 * cp * op))
    bytes_accessed = (2 * xs.size * xs.dtype.itemsize
                      + sum(int(v.size) * v.dtype.itemsize for v in kp.values())
                      + n * oh * wpp * op * 4)

    out = pl.pallas_call(
        partial(_encoder_block_kernel, tr=tr, wpp=wpp, cp=cp, dp=dp),
        out_shape=jax.ShapeDtypeStruct((n, oh * wpp, op), jnp.float32),
        grid=(n, oh // tr),
        in_specs=[
            pl.BlockSpec((1, body, 4 * cp), lambda b, i: (b, i, 0)),
            pl.BlockSpec((1, wpp, 4 * cp), lambda b, i: (b, tr * (i + 1), 0)),
            pl.BlockSpec((cp, dp), lambda b, i: (0, 0)),
            pl.BlockSpec((1, dp), lambda b, i: (0, 0)),
            pl.BlockSpec((3, 3, dp, dp), lambda b, i: (0, 0, 0, 0)),
            pl.BlockSpec((1, dp), lambda b, i: (0, 0)),
            pl.BlockSpec((dp, op), lambda b, i: (0, 0)),
            pl.BlockSpec((4 * cp, op), lambda b, i: (0, 0)),
            pl.BlockSpec((1, op), lambda b, i: (0, 0)),
        ],
        out_specs=pl.BlockSpec((1, body, op), lambda b, i: (b, i, 0)),
        scratch_shapes=[pltpu.VMEM((rows_k, 4 * cp), jnp.bfloat16)],
        compiler_params=pltpu.CompilerParams(
            dimension_semantics=("parallel", "parallel"),
            vmem_limit_bytes=32 * 1024 * 1024),
        cost_estimate=pl.CostEstimate(flops=2 * macs, transcendentals=0,
                                      bytes_accessed=int(bytes_accessed)),
    )(xs, xs, kp["w1"], kp["b1"], kp["w2"], kp["b2"],
      kp["w3"], kp["wid4"], kp["bout"])

    out = out.reshape(n, oh, wpp, op)[:, :, :ow, :cout]
    return jnp.transpose(out, (0, 3, 1, 2))             # back to NCHW


# --------------------------- parameters --------------------------------------

def _fold_bn(gamma, beta, mean, var, eps=1e-5):
    scale = gamma / jnp.sqrt(var + eps)
    shift = beta - mean * scale
    return scale.reshape(1, -1), shift.reshape(1, -1)


def init_params(key, in_ch, out_ch, hd_ch):
    ks = jax.random.split(key, 8)

    def kaiming(k, shape, fan_in, a=0.0):
        gain = math.sqrt(2.0 / (1.0 + a * a))
        return (gain / math.sqrt(fan_in)) * jax.random.normal(k, shape, jnp.float32)

    # conv weights (channels-last): 1x1 convs are (Cin, Cout); 3x3 conv is HWIO.
    w1 = kaiming(ks[0], (in_ch, hd_ch), in_ch, a=0.0)
    w2 = kaiming(ks[1], (3, 3, hd_ch, hd_ch), 9 * hd_ch, a=0.0)
    w3 = kaiming(ks[2], (hd_ch, out_ch), hd_ch, a=1.0)
    wid = kaiming(ks[3], (in_ch, out_ch), in_ch, a=1.0)

    def bn_params(k, c):
        k1, k2, k3, k4 = jax.random.split(k, 4)
        gamma = 1.0 + 0.1 * jax.random.normal(k1, (c,), jnp.float32)
        beta = 0.1 * jax.random.normal(k2, (c,), jnp.float32)
        mean = 0.1 * jax.random.normal(k3, (c,), jnp.float32)
        var = jax.random.uniform(k4, (c,), jnp.float32, minval=0.5, maxval=1.5)
        return gamma, beta, mean, var

    # NOTE: the PyTorch __init__ sets bn3.weight == 0 (zero_bn) and fresh BN
    # buffers; random-but-deterministic values are used here so every branch
    # of the datapath is numerically exercised.  The math (inference-mode BN
    # folded to scale/shift) is identical.
    s1, b1 = _fold_bn(*bn_params(ks[4], hd_ch))
    s2, b2 = _fold_bn(*bn_params(ks[5], hd_ch))
    s3, b3 = _fold_bn(*bn_params(ks[6], out_ch))
    sid, bid = _fold_bn(*bn_params(ks[7], out_ch))

    return dict(w1=w1, w2=w2, w3=w3, wid=wid,
                s1=s1, b1=b1, s2=s2, b2=b2, s3=s3, b3=b3, sid=sid, bid=bid)


# --------------------------- pure-JAX reference -------------------------------

def reference_forward(x_nchw, p):
    hp = jax.lax.Precision.HIGHEST
    x = jnp.transpose(x_nchw, (0, 2, 3, 1)).astype(jnp.float32)
    h1 = jax.nn.relu(jnp.einsum("nhwc,cd->nhwd", x, p["w1"], precision=hp)
                     * p["s1"] + p["b1"])
    h2 = jax.lax.conv_general_dilated(
        h1, p["w2"], window_strides=(2, 2), padding=((1, 1), (1, 1)),
        dimension_numbers=("NHWC", "HWIO", "NHWC"), precision=hp)
    h2 = jax.nn.relu(h2 * p["s2"] + p["b2"])
    h3 = jnp.einsum("nhwc,cd->nhwd", h2, p["w3"], precision=hp) * p["s3"] + p["b3"]
    n, h, w, c = x.shape
    avg = x.reshape(n, h // 2, 2, w // 2, 2, c).mean(axis=(2, 4))
    idp = jnp.einsum("nhwc,cd->nhwd", avg, p["wid"], precision=hp) * p["sid"] + p["bid"]
    out = jax.nn.relu(h3 + idp)
    return jnp.transpose(out, (0, 3, 1, 2))


# --------------------------- main ---------------------------------------------

if __name__ == "__main__":
    N, IN_CH, HD_CH, OUT_CH, H, W = 2, 4, 8, 16, 16, 16
    key = jax.random.PRNGKey(0)
    kx, kp = jax.random.split(key)

    x = jax.random.normal(kx, (N, IN_CH, H, W), jnp.float32)   # NCHW like PyTorch
    params = init_params(kp, IN_CH, OUT_CH, HD_CH)

    # row_tile=4 -> grid (2 batches x 2 row tiles): exercises halo + tiling.
    fwd = jax.jit(lambda xx: encoder_block_forward(xx, params, row_tile=4))
    out = jax.block_until_ready(fwd(x))
    ref = jax.block_until_ready(reference_forward(x, params))

    assert out.shape == (N, OUT_CH, H // 2, W // 2), out.shape
    max_err = float(jnp.max(jnp.abs(out - ref)))
    # bf16 matmul inputs (f32 accumulation) vs f32 HIGHEST-precision reference.
    assert bool(jnp.allclose(out, ref, rtol=5e-2, atol=5e-2)), max_err
    print("KERNEL_OK")
</pallas_src>

<mosaic_0001>
module attributes {stable_mosaic.version = 11 : i64} {
  func.func @_encoder_block_kernel(%arg0: i32, %arg1: i32, %arg2: memref<1x64x512xbf16, #tpu.memory_space<vmem>>, %arg3: memref<1x16x512xbf16, #tpu.memory_space<vmem>>, %arg4: memref<128x128xbf16, #tpu.memory_space<vmem>>, %arg5: memref<1x128xf32, #tpu.memory_space<vmem>>, %arg6: memref<3x3x128x128xbf16, #tpu.memory_space<vmem>>, %arg7: memref<1x128xf32, #tpu.memory_space<vmem>>, %arg8: memref<128x128xbf16, #tpu.memory_space<vmem>>, %arg9: memref<512x128xbf16, #tpu.memory_space<vmem>>, %arg10: memref<1x128xf32, #tpu.memory_space<vmem>>, %arg11: memref<1x64x128xf32, #tpu.memory_space<vmem>>, %arg12: memref<88x512xbf16, #tpu.memory_space<vmem>>) attributes {dimension_semantics = [#tpu.dimension_semantics<parallel>, #tpu.dimension_semantics<parallel>], iteration_bounds = array<i64: 2, 2>, scalar_prefetch = 0 : i64, scratch_operands = 1 : i64, tpu.core_type = #tpu.core_type<tc>, window_params = [{transform_indices = @transform_0, window_bounds = array<i64: 1, 64, 512>}, {transform_indices = @transform_1, window_bounds = array<i64: 1, 16, 512>}, {pipeline_mode = #tpu.pipeline_mode<synchronous>, transform_indices = @transform_2, window_bounds = array<i64: 128, 128>}, {pipeline_mode = #tpu.pipeline_mode<synchronous>, transform_indices = @transform_3, window_bounds = array<i64: 1, 128>}, {pipeline_mode = #tpu.pipeline_mode<synchronous>, transform_indices = @transform_4, window_bounds = array<i64: 3, 3, 128, 128>}, {pipeline_mode = #tpu.pipeline_mode<synchronous>, transform_indices = @transform_5, window_bounds = array<i64: 1, 128>}, {pipeline_mode = #tpu.pipeline_mode<synchronous>, transform_indices = @transform_6, window_bounds = array<i64: 128, 128>}, {pipeline_mode = #tpu.pipeline_mode<synchronous>, transform_indices = @transform_7, window_bounds = array<i64: 512, 128>}, {pipeline_mode = #tpu.pipeline_mode<synchronous>, transform_indices = @transform_8, window_bounds = array<i64: 1, 128>}, {transform_indices = @transform_9, window_bounds = array<i64: 1, 64, 128>}]} {
    %c0 = arith.constant 0 : index
    %c0_0 = arith.constant 0 : index
    %c0_1 = arith.constant 0 : index
    %0 = vector.load %arg2[%c0, %c0_0, %c0_1] : memref<1x64x512xbf16, #tpu.memory_space<vmem>>, vector<1x64x512xbf16>
    %1 = vector.shape_cast %0 : vector<1x64x512xbf16> to vector<64x512xbf16>
    %c0_2 = arith.constant 0 : index
    %c0_3 = arith.constant 0 : index
    %2 = vector.load %arg12[%c0_2, %c0_3] : memref<88x512xbf16, #tpu.memory_space<vmem>>, vector<64x512xbf16>
    tpu.vector_store %arg12[%c0_2, %c0_3], %1 {strides = array<i32>} : memref<88x512xbf16, #tpu.memory_space<vmem>>, vector<64x512xbf16>,
    %c0_4 = arith.constant 0 : index
    %c0_5 = arith.constant 0 : index
    %c0_6 = arith.constant 0 : index
    %3 = vector.load %arg3[%c0_4, %c0_5, %c0_6] : memref<1x16x512xbf16, #tpu.memory_space<vmem>>, vector<1x16x512xbf16>
    %4 = vector.shape_cast %3 : vector<1x16x512xbf16> to vector<16x512xbf16>
    %c64 = arith.constant 64 : index
    %c0_7 = arith.constant 0 : index
    %5 = vector.load %arg12[%c64, %c0_7] : memref<88x512xbf16, #tpu.memory_space<vmem>>, vector<16x512xbf16>
    tpu.vector_store %arg12[%c64, %c0_7], %4 {strides = array<i32>} : memref<88x512xbf16, #tpu.memory_space<vmem>>, vector<16x512xbf16>,
    %cst = arith.constant 0.000000e+00 : bf16
    %6 = vector.broadcast %cst : bf16 to vector<8x512xbf16>
    %c80 = arith.constant 80 : index
    %c0_8 = arith.constant 0 : index
    %7 = vector.load %arg12[%c80, %c0_8] : memref<88x512xbf16, #tpu.memory_space<vmem>>, vector<8x512xbf16>
    tpu.vector_store %arg12[%c80, %c0_8], %6 {strides = array<i32>} : memref<88x512xbf16, #tpu.memory_space<vmem>>, vector<8x512xbf16>,
    %c0_9 = arith.constant 0 : index
    %c0_10 = arith.constant 0 : index
    %8 = vector.load %arg12[%c0_9, %c0_10] : memref<88x512xbf16, #tpu.memory_space<vmem>>, vector<88x512xbf16>
    %9 = vector.extract_strided_slice %8 {offsets = [0, 0], sizes = [88, 128], strides = [1, 1]} : vector<88x512xbf16> to vector<88x128xbf16>
    %c0_11 = arith.constant 0 : index
    %c0_12 = arith.constant 0 : index
    %10 = vector.load %arg4[%c0_11, %c0_12] : memref<128x128xbf16, #tpu.memory_space<vmem>>, vector<128x128xbf16>
    %cst_13 = arith.constant dense<0.000000e+00> : vector<88x128xf32>
    %11 = tpu.matmul %9, %10, %cst_13 {dimension_numbers = #tpu.dot_dimension_numbers<[1], [0], [0], [1], [0, 0, 1, 1], [], []>} : vector<88x128xbf16>, vector<128x128xbf16>, vector<88x128xf32> -> vector<88x128xf32>
    %c0_14 = arith.constant 0 : index
    %c0_15 = arith.constant 0 : index
    %12 = vector.load %arg5[%c0_14, %c0_15] : memref<1x128xf32, #tpu.memory_space<vmem>>, vector<1x128xf32>
    %13 = vector.broadcast %12 : vector<1x128xf32> to vector<88x128xf32>
    %14 = arith.addf %11, %13 : vector<88x128xf32>
    %cst_16 = arith.constant 0.000000e+00 : f32
    %15 = vector.broadcast %cst_16 : f32 to vector<88x128xf32>
    %16 = arith.maximumf %14, %15 : vector<88x128xf32>
    %17 = arith.truncf %16 : vector<88x128xf32> to vector<88x128xbf16>
    %18 = vector.extract_strided_slice %8 {offsets = [0, 128], sizes = [88, 128], strides = [1, 1]} : vector<88x512xbf16> to vector<88x128xbf16>
    %c0_17 = arith.constant 0 : index
    %c0_18 = arith.constant 0 : index
    %19 = vector.load %arg4[%c0_17, %c0_18] : memref<128x128xbf16, #tpu.memory_space<vmem>>, vector<128x128xbf16>
    %cst_19 = arith.constant dense<0.000000e+00> : vector<88x128xf32>
    %20 = tpu.matmul %18, %19, %cst_19 {dimension_numbers = #tpu.dot_dimension_numbers<[1], [0], [0], [1], [0, 0, 1, 1], [], []>} : vector<88x128xbf16>, vector<128x128xbf16>, vector<88x128xf32> -> vector<88x128xf32>
    %c0_20 = arith.constant 0 : index
    %c0_21 = arith.constant 0 : index
    %21 = vector.load %arg5[%c0_20, %c0_21] : memref<1x128xf32, #tpu.memory_space<vmem>>, vector<1x128xf32>
    %22 = vector.broadcast %21 : vector<1x128xf32> to vector<88x128xf32>
    %23 = arith.addf %20, %22 : vector<88x128xf32>
    %cst_22 = arith.constant 0.000000e+00 : f32
    %24 = vector.broadcast %cst_22 : f32 to vector<88x128xf32>
    %25 = arith.maximumf %23, %24 : vector<88x128xf32>
    %26 = arith.truncf %25 : vector<88x128xf32> to vector<88x128xbf16>
    %27 = vector.extract_strided_slice %8 {offsets = [0, 256], sizes = [88, 128], strides = [1, 1]} : vector<88x512xbf16> to vector<88x128xbf16>
    %c0_23 = arith.constant 0 : index
    %c0_24 = arith.constant 0 : index
    %28 = vector.load %arg4[%c0_23, %c0_24] : memref<128x128xbf16, #tpu.memory_space<vmem>>, vector<128x128xbf16>
    %cst_25 = arith.constant dense<0.000000e+00> : vector<88x128xf32>
    %29 = tpu.matmul %27, %28, %cst_25 {dimension_numbers = #tpu.dot_dimension_numbers<[1], [0], [0], [1], [0, 0, 1, 1], [], []>} : vector<88x128xbf16>, vector<128x128xbf16>, vector<88x128xf32> -> vector<88x128xf32>
    %c0_26 = arith.constant 0 : index
    %c0_27 = arith.constant 0 : index
    %30 = vector.load %arg5[%c0_26, %c0_27] : memref<1x128xf32, #tpu.memory_space<vmem>>, vector<1x128xf32>
    %31 = vector.broadcast %30 : vector<1x128xf32> to vector<88x128xf32>
    %32 = arith.addf %29, %31 : vector<88x128xf32>
    %cst_28 = arith.constant 0.000000e+00 : f32
    %33 = vector.broadcast %cst_28 : f32 to vector<88x128xf32>
    %34 = arith.maximumf %32, %33 : vector<88x128xf32>
    %35 = arith.truncf %34 : vector<88x128xf32> to vector<88x128xbf16>
    %36 = vector.extract_strided_slice %8 {offsets = [0, 384], sizes = [88, 128], strides = [1, 1]} : vector<88x512xbf16> to vector<88x128xbf16>
    %c0_29 = arith.constant 0 : index
    %c0_30 = arith.constant 0 : index
    %37 = vector.load %arg4[%c0_29, %c0_30] : memref<128x128xbf16, #tpu.memory_space<vmem>>, vector<128x128xbf16>
    %cst_31 = arith.constant dense<0.000000e+00> : vector<88x128xf32>
    %38 = tpu.matmul %36, %37, %cst_31 {dimension_numbers = #tpu.dot_dimension_numbers<[1], [0], [0], [1], [0, 0, 1, 1], [], []>} : vector<88x128xbf16>, vector<128x128xbf16>, vector<88x128xf32> -> vector<88x128xf32>
    %c0_32 = arith.constant 0 : index
    %c0_33 = arith.constant 0 : index
    %39 = vector.load %arg5[%c0_32, %c0_33] : memref<1x128xf32, #tpu.memory_space<vmem>>, vector<1x128xf32>
    %40 = vector.broadcast %39 : vector<1x128xf32> to vector<88x128xf32>
    %41 = arith.addf %38, %40 : vector<88x128xf32>
    %cst_34 = arith.constant 0.000000e+00 : f32
    %42 = vector.broadcast %cst_34 : f32 to vector<88x128xf32>
    %43 = arith.maximumf %41, %42 : vector<88x128xf32>
    %44 = arith.truncf %43 : vector<88x128xf32> to vector<88x128xbf16>
    %cst_35 = arith.constant 0.000000e+00 : f32
    %45 = vector.broadcast %cst_35 : f32 to vector<64x128xf32>
    %46 = vector.extract_strided_slice %44 {offsets = [0, 0], sizes = [64, 128], strides = [1, 1]} : vector<88x128xbf16> to vector<64x128xbf16>
    %c0_36 = arith.constant 0 : index
    %c0_37 = arith.constant 0 : index
    %c0_38 = arith.constant 0 : index
    %c0_39 = arith.constant 0 : index
    %47 = vector.load %arg6[%c0_36, %c0_37, %c0_38, %c0_39] : memref<3x3x128x128xbf16, #tpu.memory_space<vmem>>, vector<1x1x128x128xbf16>
    %48 = vector.shape_cast %47 : vector<1x1x128x128xbf16> to vector<128x128xbf16>
    %cst_40 = arith.constant dense<0.000000e+00> : vector<64x128xf32>
    %49 = tpu.matmul %46, %48, %cst_40 {dimension_numbers = #tpu.dot_dimension_numbers<[1], [0], [0], [1], [0, 0, 1, 1], [], []>} : vector<64x128xbf16>, vector<128x128xbf16>, vector<64x128xf32> -> vector<64x128xf32>
    %50 = arith.addf %45, %49 : vector<64x128xf32>
    %51 = vector.extract_strided_slice %35 {offsets = [1, 0], sizes = [64, 128], strides = [1, 1]} : vector<88x128xbf16> to vector<64x128xbf16>
    %c0_41 = arith.constant 0 : index
    %c1 = arith.constant 1 : index
    %c0_42 = arith.constant 0 : index
    %c0_43 = arith.constant 0 : index
    %52 = vector.load %arg6[%c0_41, %c1, %c0_42, %c0_43] : memref<3x3x128x128xbf16, #tpu.memory_space<vmem>>, vector<1x1x128x128xbf16>
    %53 = vector.shape_cast %52 : vector<1x1x128x128xbf16> to vector<128x128xbf16>
    %cst_44 = arith.constant dense<0.000000e+00> : vector<64x128xf32>
    %54 = tpu.matmul %51, %53, %cst_44 {dimension_numbers = #tpu.dot_dimension_numbers<[1], [0], [0], [1], [0, 0, 1, 1], [], []>} : vector<64x128xbf16>, vector<128x128xbf16>, vector<64x128xf32> -> vector<64x128xf32>
    %55 = arith.addf %50, %54 : vector<64x128xf32>
    %56 = vector.extract_strided_slice %44 {offsets = [1, 0], sizes = [64, 128], strides = [1, 1]} : vector<88x128xbf16> to vector<64x128xbf16>
    %c0_45 = arith.constant 0 : index
    %c2 = arith.constant 2 : index
    %c0_46 = arith.constant 0 : index
    %c0_47 = arith.constant 0 : index
    %57 = vector.load %arg6[%c0_45, %c2, %c0_46, %c0_47] : memref<3x3x128x128xbf16, #tpu.memory_space<vmem>>, vector<1x1x128x128xbf16>
    %58 = vector.shape_cast %57 : vector<1x1x128x128xbf16> to vector<128x128xbf16>
    %cst_48 = arith.constant dense<0.000000e+00> : vector<64x128xf32>
    %59 = tpu.matmul %56, %58, %cst_48 {dimension_numbers = #tpu.dot_dimension_numbers<[1], [0], [0], [1], [0, 0, 1, 1], [], []>} : vector<64x128xbf16>, vector<128x128xbf16>, vector<64x128xf32> -> vector<64x128xf32>
    %60 = arith.addf %55, %59 : vector<64x128xf32>
    %61 = vector.extract_strided_slice %26 {offsets = [16, 0], sizes = [64, 128], strides = [1, 1]} : vector<88x128xbf16> to vector<64x128xbf16>
    %c1_49 = arith.constant 1 : index
    %c0_50 = arith.constant 0 : index
    %c0_51 = arith.constant 0 : index
    %c0_52 = arith.constant 0 : index
    %62 = vector.load %arg6[%c1_49, %c0_50, %c0_51, %c0_52] : memref<3x3x128x128xbf16, #tpu.memory_space<vmem>>, vector<1x1x128x128xbf16>
    %63 = vector.shape_cast %62 : vector<1x1x128x128xbf16> to vector<128x128xbf16>
    %cst_53 = arith.constant dense<0.000000e+00> : vector<64x128xf32>
    %64 = tpu.matmul %61, %63, %cst_53 {dimension_numbers = #tpu.dot_dimension_numbers<[1], [0], [0], [1], [0, 0, 1, 1], [], []>} : vector<64x128xbf16>, vector<128x128xbf16>, vector<64x128xf32> -> vector<64x128xf32>
    %65 = arith.addf %60, %64 : vector<64x128xf32>
    %66 = vector.extract_strided_slice %17 {offsets = [17, 0], sizes = [64, 128], strides = [1, 1]} : vector<88x128xbf16> to vector<64x128xbf16>
    %c1_54 = arith.constant 1 : index
    %c1_55 = arith.constant 1 : index
    %c0_56 = arith.constant 0 : index
    %c0_57 = arith.constant 0 : index
    %67 = vector.load %arg6[%c1_54, %c1_55, %c0_56, %c0_57] : memref<3x3x128x128xbf16, #tpu.memory_space<vmem>>, vector<1x1x128x128xbf16>
    %68 = vector.shape_cast %67 : vector<1x1x128x128xbf16> to vector<128x128xbf16>
    %cst_58 = arith.constant dense<0.000000e+00> : vector<64x128xf32>
    %69 = tpu.matmul %66, %68, %cst_58 {dimension_numbers = #tpu.dot_dimension_numbers<[1], [0], [0], [1], [0, 0, 1, 1], [], []>} : vector<64x128xbf16>, vector<128x128xbf16>, vector<64x128xf32> -> vector<64x128xf32>
    %70 = arith.addf %65, %69 : vector<64x128xf32>
    %71 = vector.extract_strided_slice %26 {offsets = [17, 0], sizes = [64, 128], strides = [1, 1]} : vector<88x128xbf16> to vector<64x128xbf16>
    %c1_59 = arith.constant 1 : index
    %c2_60 = arith.constant 2 : index
    %c0_61 = arith.constant 0 : index
    %c0_62 = arith.constant 0 : index
    %72 = vector.load %arg6[%c1_59, %c2_60, %c0_61, %c0_62] : memref<3x3x128x128xbf16, #tpu.memory_space<vmem>>, vector<1x1x128x128xbf16>
    %73 = vector.shape_cast %72 : vector<1x1x128x128xbf16> to vector<128x128xbf16>
    %cst_63 = arith.constant dense<0.000000e+00> : vector<64x128xf32>
    %74 = tpu.matmul %71, %73, %cst_63 {dimension_numbers = #tpu.dot_dimension_numbers<[1], [0], [0], [1], [0, 0, 1, 1], [], []>} : vector<64x128xbf16>, vector<128x128xbf16>, vector<64x128xf32> -> vector<64x128xf32>
    %75 = arith.addf %70, %74 : vector<64x128xf32>
    %76 = vector.extract_strided_slice %44 {offsets = [16, 0], sizes = [64, 128], strides = [1, 1]} : vector<88x128xbf16> to vector<64x128xbf16>
    %c2_64 = arith.constant 2 : index
    %c0_65 = arith.constant 0 : index
    %c0_66 = arith.constant 0 : index
    %c0_67 = arith.constant 0 : index
    %77 = vector.load %arg6[%c2_64, %c0_65, %c0_66, %c0_67] : memref<3x3x128x128xbf16, #tpu.memory_space<vmem>>, vector<1x1x128x128xbf16>
    %78 = vector.shape_cast %77 : vector<1x1x128x128xbf16> to vector<128x128xbf16>
    %cst_68 = arith.constant dense<0.000000e+00> : vector<64x128xf32>
    %79 = tpu.matmul %76, %78, %cst_68 {dimension_numbers = #tpu.dot_dimension_numbers<[1], [0], [0], [1], [0, 0, 1, 1], [], []>} : vector<64x128xbf16>, vector<128x128xbf16>, vector<64x128xf32> -> vector<64x128xf32>
    %80 = arith.addf %75, %79 : vector<64x128xf32>
    %81 = vector.extract_strided_slice %35 {offsets = [17, 0], sizes = [64, 128], strides = [1, 1]} : vector<88x128xbf16> to vector<64x128xbf16>
    %c2_69 = arith.constant 2 : index
    %c1_70 = arith.constant 1 : index
    %c0_71 = arith.constant 0 : index
    %c0_72 = arith.constant 0 : index
    %82 = vector.load %arg6[%c2_69, %c1_70, %c0_71, %c0_72] : memref<3x3x128x128xbf16, #tpu.memory_space<vmem>>, vector<1x1x128x128xbf16>
    %83 = vector.shape_cast %82 : vector<1x1x128x128xbf16> to vector<128x128xbf16>
    %cst_73 = arith.constant dense<0.000000e+00> : vector<64x128xf32>
    %84 = tpu.matmul %81, %83, %cst_73 {dimension_numbers = #tpu.dot_dimension_numbers<[1], [0], [0], [1], [0, 0, 1, 1], [], []>} : vector<64x128xbf16>, vector<128x128xbf16>, vector<64x128xf32> -> vector<64x128xf32>
    %85 = arith.addf %80, %84 : vector<64x128xf32>
    %86 = vector.extract_strided_slice %44 {offsets = [17, 0], sizes = [64, 128], strides = [1, 1]} : vector<88x128xbf16> to vector<64x128xbf16>
    %c2_74 = arith.constant 2 : index
    %c2_75 = arith.constant 2 : index
    %c0_76 = arith.constant 0 : index
    %c0_77 = arith.constant 0 : index
    %87 = vector.load %arg6[%c2_74, %c2_75, %c0_76, %c0_77] : memref<3x3x128x128xbf16, #tpu.memory_space<vmem>>, vector<1x1x128x128xbf16>
    %88 = vector.shape_cast %87 : vector<1x1x128x128xbf16> to vector<128x128xbf16>
    %cst_78 = arith.constant dense<0.000000e+00> : vector<64x128xf32>
    %89 = tpu.matmul %86, %88, %cst_78 {dimension_numbers = #tpu.dot_dimension_numbers<[1], [0], [0], [1], [0, 0, 1, 1], [], []>} : vector<64x128xbf16>, vector<128x128xbf16>, vector<64x128xf32> -> vector<64x128xf32>
    %90 = arith.addf %85, %89 : vector<64x128xf32>
    %c0_79 = arith.constant 0 : index
    %c0_80 = arith.constant 0 : index
    %91 = vector.load %arg7[%c0_79, %c0_80] : memref<1x128xf32, #tpu.memory_space<vmem>>, vector<1x128xf32>
    %92 = vector.broadcast %91 : vector<1x128xf32> to vector<64x128xf32>
    %93 = arith.addf %90, %92 : vector<64x128xf32>
    %cst_81 = arith.constant 0.000000e+00 : f32
    %94 = vector.broadcast %cst_81 : f32 to vector<64x128xf32>
    %95 = arith.maximumf %93, %94 : vector<64x128xf32>
    %96 = arith.truncf %95 : vector<64x128xf32> to vector<64x128xbf16>
    %97 = vector.extract_strided_slice %8 {offsets = [17, 0], sizes = [64, 512], strides = [1, 1]} : vector<88x512xbf16> to vector<64x512xbf16>
    %c0_82 = arith.constant 0 : index
    %c0_83 = arith.constant 0 : index
    %98 = vector.load %arg8[%c0_82, %c0_83] : memref<128x128xbf16, #tpu.memory_space<vmem>>, vector<128x128xbf16>
    %cst_84 = arith.constant dense<0.000000e+00> : vector<64x128xf32>
    %99 = tpu.matmul %96, %98, %cst_84 {dimension_numbers = #tpu.dot_dimension_numbers<[1], [0], [0], [1], [0, 0, 1, 1], [], []>} : vector<64x128xbf16>, vector<128x128xbf16>, vector<64x128xf32> -> vector<64x128xf32>
    %c0_85 = arith.constant 0 : index
    %c0_86 = arith.constant 0 : index
    %100 = vector.load %arg9[%c0_85, %c0_86] : memref<512x128xbf16, #tpu.memory_space<vmem>>, vector<512x128xbf16>
    %cst_87 = arith.constant dense<0.000000e+00> : vector<64x128xf32>
    %101 = tpu.matmul %97, %100, %cst_87 {dimension_numbers = #tpu.dot_dimension_numbers<[1], [0], [0], [1], [0, 0, 1, 1], [], []>} : vector<64x512xbf16>, vector<512x128xbf16>, vector<64x128xf32> -> vector<64x128xf32>
    %102 = arith.addf %99, %101 : vector<64x128xf32>
    %c0_88 = arith.constant 0 : index
    %c0_89 = arith.constant 0 : index
    %103 = vector.load %arg10[%c0_88, %c0_89] : memref<1x128xf32, #tpu.memory_space<vmem>>, vector<1x128xf32>
    %104 = vector.broadcast %103 : vector<1x128xf32> to vector<64x128xf32>
    %105 = arith.addf %102, %104 : vector<64x128xf32>
    %cst_90 = arith.constant 0.000000e+00 : f32
    %106 = vector.broadcast %cst_90 : f32 to vector<64x128xf32>
    %107 = arith.maximumf %105, %106 : vector<64x128xf32>
    %c0_91 = arith.constant 0 : index
    %c0_92 = arith.constant 0 : index
    %c0_93 = arith.constant 0 : index
    %108 = vector.load %arg11[%c0_91, %c0_92, %c0_93] : memref<1x64x128xf32, #tpu.memory_space<vmem>>, vector<1x64x128xf32>
    %109 = vector.shape_cast %108 : vector<1x64x128xf32> to vector<64x128xf32>
    %110 = vector.shape_cast %107 : vector<64x128xf32> to vector<1x64x128xf32>
    tpu.vector_store %arg11[%c0_91, %c0_92, %c0_93], %110 {strides = array<i32>} : memref<1x64x128xf32, #tpu.memory_space<vmem>>, vector<1x64x128xf32>,
    return
  }
  func.func @transform_0(%arg0: i32, %arg1: i32) -> (i32, i32, i32) {
    %c0_i32 = arith.constant 0 : i32
    %c0_i32_0 = arith.constant 0 : i32
    return %arg0, %arg1, %c0_i32 : i32, i32, i32
  }
  func.func @transform_1(%arg0: i32, %arg1: i32) -> (i32, i32, i32) {
    %c1_i32 = arith.constant 1 : i32
    %0 = arith.addi %arg1, %c1_i32 : i32
    %c4_i32 = arith.constant 4 : i32
    %1 = arith.muli %c4_i32, %0 : i32
    %c0_i32 = arith.constant 0 : i32
    %c0_i32_0 = arith.constant 0 : i32
    return %arg0, %1, %c0_i32 : i32, i32, i32
  }
  func.func @transform_2(%arg0: i32, %arg1: i32) -> (i32, i32) {
    %c0_i32 = arith.constant 0 : i32
    %c0_i32_0 = arith.constant 0 : i32
    %c0_i32_1 = arith.constant 0 : i32
    return %c0_i32, %c0_i32_0 : i32, i32
  }
  func.func @transform_3(%arg0: i32, %arg1: i32) -> (i32, i32) {
    %c0_i32 = arith.constant 0 : i32
    %c0_i32_0 = arith.constant 0 : i32
    %c0_i32_1 = arith.constant 0 : i32
    return %c0_i32, %c0_i32_0 : i32, i32
  }
  func.func @transform_4(%arg0: i32, %arg1: i32) -> (i32, i32, i32, i32) {
    %c0_i32 = arith.constant 0 : i32
    %c0_i32_0 = arith.constant 0 : i32
    %c0_i32_1 = arith.constant 0 : i32
    %c0_i32_2 = arith.constant 0 : i32
    %c0_i32_3 = arith.constant 0 : i32
    return %c0_i32, %c0_i32_0, %c0_i32_1, %c0_i32_2 : i32, i32, i32, i32
  }
  func.func @transform_5(%arg0: i32, %arg1: i32) -> (i32, i32) {
    %c0_i32 = arith.constant 0 : i32
    %c0_i32_0 = arith.constant 0 : i32
    %c0_i32_1 = arith.constant 0 : i32
    return %c0_i32, %c0_i32_0 : i32, i32
  }
  func.func @transform_6(%arg0: i32, %arg1: i32) -> (i32, i32) {
    %c0_i32 = arith.constant 0 : i32
    %c0_i32_0 = arith.constant 0 : i32
    %c0_i32_1 = arith.constant 0 : i32
    return %c0_i32, %c0_i32_0 : i32, i32
  }
  func.func @transform_7(%arg0: i32, %arg1: i32) -> (i32, i32) {
    %c0_i32 = arith.constant 0 : i32
    %c0_i32_0 = arith.constant 0 : i32
    %c0_i32_1 = arith.constant 0 : i32
    return %c0_i32, %c0_i32_0 : i32, i32
  }
  func.func @transform_8(%arg0: i32, %arg1: i32) -> (i32, i32) {
    %c0_i32 = arith.constant 0 : i32
    %c0_i32_0 = arith.constant 0 : i32
    %c0_i32_1 = arith.constant 0 : i32
    return %c0_i32, %c0_i32_0 : i32, i32
  }
  func.func @transform_9(%arg0: i32, %arg1: i32) -> (i32, i32, i32) {
    %c0_i32 = arith.constant 0 : i32
    %c0_i32_0 = arith.constant 0 : i32
    return %arg0, %arg1, %c0_i32 : i32, i32, i32
  }
}

</mosaic_0001>

<bundles_post_ra>
// kernel: _lambda_.1
= control target key start
LH: loop header
LB: loop body
LE: loop exit
PB: predicated region body
PF: predicated region fallthrough
CT: control target
= control target key end

     0   :  { %s4606_s30 = smov 0   ;;  %s4608_s10 = smov 0   ;;  %s5424_s0 = inlined_call_operand.vmem [shape: bf16[2,144,512], index: 0, kind: input, shape index: {}, may-alias: {0,1}]   ;;  %s5425_s1 = inlined_call_operand.vmem [shape: bf16[2,144,512], index: 1, kind: input, shape index: {}, may-alias: {0,1}]   ;;  %s5426_s2 = inlined_call_operand.vmem [shape: bf16[128,128], index: 2, kind: input, shape index: {}]   ;;  %s5427_s3 = inlined_call_operand.vmem [shape: f32[1,128], index: 3, kind: input, shape index: {}]   ;;  %s5428_s4 = inlined_call_operand.vmem [shape: bf16[3,3,128,128], index: 4, kind: input, shape index: {}]   ;;  %s5429_s5 = inlined_call_operand.vmem [shape: f32[1,128], index: 5, kind: input, shape index: {}]   ;;  %s5430_s6 = inlined_call_operand.vmem [shape: bf16[128,128], index: 6, kind: input, shape index: {}]   ;;  %s5431_s7 = inlined_call_operand.vmem [shape: bf16[512,128], index: 7, kind: input, shape index: {}]   ;;  %s5432_s8 = inlined_call_operand.vmem [shape: f32[1,128], index: 8, kind: input, shape index: {}]   ;;  %s5433_s9 = inlined_call_operand.vmem [shape: f32[2,128,128], index: 9, kind: output, shape index: {}]  }
   0x1   :  { %s4610_s11 = smov 0   ;;  %s4612_s12 = smov 0  }
   0x2   :  { %s4614_s13 = smov 0  }
   0x3 LB: > { %s28_s14 = sadd.s32 1, %s4545_s11  ;;  %s31_s15 = sadd.s32 1, %s4549_s12  ;;  %s4553_s13 = sphi %s4614_s13, %s19_s13   ;;  %s4549_s12 = sphi %s4612_s12, %s5437_s12   ;;  %s4545_s11 = sphi %s4610_s11, %s5436_s11   ;;  %s4541_s10 = sphi %s4608_s10, %s5435_s10   ;;  %s4537_s30 = sphi %s4606_s30, %s5434_s30  }
   0x4   : > { %p29_p0 = scmp.ge.s32.totalorder %s28_s14, 2  ;;  %p3338_p1 = scmp.ge.s32.totalorder %s4553_s13, 1 }
   0x5   : > { %p345_p2 = scmp.lt.s32.totalorder %s4553_s13, 5 }
   0x6   : > { %s5439_s14 = smov (%p29_p0, %s28_s14), 0  ;;  %s5441_s15 = smov (!%p29_p0, %s31_s15), %s4549_s12 }
   0x7   : > { %p346_p3 = pnand %p3338_p1, %p345_p2  ;;  %p33_p4 = scmp.ge.s32.totalorder %s5441_s15, 2 }
   0x8   : > { %v4639_v0 = vld [vmem:[%s5426_s2] sm:$0xff] (!%p346_p3)   ;;  %s4641_s18 = sshll.u32 (!%p346_p3), %s4537_s30, 3  ;;  %v4646_v1 = vld [vmem:[%s5426_s2 + $0x8] sm:$0xff] (!%p346_p3)   ;;  %p413_p5 = scmp.lt.s32.totalorder (!%p346_p3), %s4541_s10, 1  ;;  %v4657_v2 = vld [vmem:[%s5426_s2 + $0x10] sm:$0xff] (!%p346_p3)   ;;  %v4555_v14 = vmov (!%p346_p3), 0  }
   0x9   : > { %s5443_s15 = smov (%p33_p4, %s5441_s15), 0  ;;  %349 = sbr.rel (%p346_p3) target bundleno = 1038 (0x40e), region = 56 }
   0xa   : > { %3891 = vmatprep.subr.bf16.mxu1 (!%p346_p3), %v4639_v0  ;;  %p415_p6 = scmp.lt.s32.totalorder (!%p346_p3), %s4641_s18, 17  ;;  %s3634_s27 = sadd.s32 (!%p346_p3), 8, %s4641_s18  ;;  %v4667_v3 = vld [vmem:[%s5426_s2 + $0x18] sm:$0xff] (!%p346_p3)   ;;  %v4680_v5 = vld [vmem:[%s5426_s2 + $0x20] sm:$0xff] (!%p346_p3)   ;;  %v4692_v6 = vld [vmem:[%s5426_s2 + $0x28] sm:$0xff] (!%p346_p3)   ;;  %v4723_v15 = vcombine.low (!%p346_p3), %v4555_v14, %v4555_v14  ;;  %v4747_v21 = vcombine.high (!%p346_p3), %v4555_v14, %v4555_v14 }
   0xb   : > { %3892 = vmatpush3.bf16.msra.mxu1 (!%p346_p3), %v4639_v0  ;;  %p433_p7 = scmp.lt.s32.totalorder (!%p346_p3), %s3634_s27, 17  ;;  %v4699_v7 = vld [vmem:[%s5426_s2 + $0x30] sm:$0xff] (!%p346_p3)   ;;  %v4705_v8 = vld [vmem:[%s5426_s2 + $0x38] sm:$0xff] (!%p346_p3)   ;;  %v4387_v31 = vld [vmem:[%s5428_s4 + $0x40] sm:$0xff] (!%p346_p3)   ;;  %vm1114_vm0 = vsmask.f32 (!%p346_p3), 7424 }
   0xc   : > { %3893 = vmatprep.subr.bf16.mxu1 (!%p346_p3), %v4646_v1  ;;  %v4388_v32 = vld [vmem:[%s5428_s4 + $0x48] sm:$0xff] (!%p346_p3)   ;;  %v4389_v33 = vld [vmem:[%s5428_s4 + $0x50] sm:$0xff] (!%p346_p3)   ;;  %v4390_v34 = vld [vmem:[%s5428_s4 + $0x58] sm:$0xff] (!%p346_p3)   ;;  %p446_p8 = scmp.lt.s32.totalorder (!%p346_p3), %s4641_s18, 15 }
   0xd   : > { %v4391_v35 = vld [vmem:[%s5428_s4 + $0x60] sm:$0xff] (!%p346_p3)   ;;  %v4393_v37 = vld [vmem:[%s5428_s4 + $0x68] sm:$0xff] (!%p346_p3)   ;;  %v4395_v39 = vld [vmem:[%s5428_s4 + $0x70] sm:$0xff] (!%p346_p3)  }
   0xe   : > { %v4392_v36 = vld [vmem:[%s5428_s4] sm:$0xff] (!%p346_p3)   ;;  %v4394_v38 = vld [vmem:[%s5428_s4 + $0x8] sm:$0xff] (!%p346_p3)   ;;  %v4396_v40 = vld [vmem:[%s5428_s4 + $0x10] sm:$0xff] (!%p346_p3)  }
   0xf   : > { %3894 = vmatpush3.bf16.msra.mxu1 (!%p346_p3), %v4646_v1  ;;  %4027 = vmatprep.subr.bf16.mxu0 (!%p346_p3), %v4392_v36  ;;  %v4397_v41 = vld [vmem:[%s5428_s4 + $0x78] sm:$0xff] (!%p346_p3)   ;;  %v4399_v43 = vld [vmem:[%s5428_s4 + $0x20] sm:$0xff] (!%p346_p3)   ;;  %v4400_v44 = vld [vmem:[%s5428_s4 + $0x28] sm:$0xff] (!%p346_p3)  }
  0x10   : > { %s5445_s10 = smov (!%p413_p5, %s4541_s10), 1  ;;  %3895 = vmatprep.subr.bf16.mxu1 %v4657_v2  ;;  %s5447_s27 = smov (!%p433_p7, %s3634_s27), 17  ;;  %4028 = vmatpush3.bf16.msra.mxu0 %v4392_v36  ;;  %v4398_v42 = vld [vmem:[%s5428_s4 + $0x18] sm:$0xff]   ;;  %v4401_v45 = vld [vmem:[%s5428_s4 + $0x30] sm:$0xff]   ;;  %v4837_v47 = vld [vmem:[%s5428_s4 + $0x80] sm:$0xff]  }
  0x11   : > { %s416_s23 = scalar_select %p415_p6, %s4641_s18, 17  ;;  %4029 = vmatprep.subr.bf16.mxu0 %v4394_v38  ;;  %v4402_v46 = vld [vmem:[%s5428_s4 + $0x38] sm:$0xff]   ;;  %v4843_v48 = vld [vmem:[%s5427_s3] ss:$0 sm:$0xff] }
  0x12   : > { %s4307_s24 = smul.u32 72, %s5445_s10  ;;  %s3344_s22 = sshll.u32 %s5447_s27, 2 }
  0x13   : > { %s3340_s25 = sshll.u32 %s416_s23, 2  ;;  %3896 = vmatpush3.bf16.msra.mxu1 %v4657_v2  ;;  %s5449_s18 = smov (!%p446_p8, %s4641_s18), 15 }
  0x14   : > { %s419_s26 = sadd.s32 %s4307_s24, %s3340_s25  ;;  %3897 = vmatprep.subr.bf16.mxu1 %v4667_v3  ;;  %s437_s23 = sadd.s32 %s4307_s24, %s3344_s22  ;;  %4030 = vmatpush3.bf16.msra.mxu0 %v4394_v38 }
  0x15   : > { %s3341_s30 = sshll.u32 %s419_s26, 2  ;;  %s3345_s25 = sshll.u32 %s437_s23, 2  ;;  %4031 = vmatprep.subr.bf16.mxu0 %v4396_v40 }
  0x16   : > { %s4672_s19 = scalar_lea.vmem %s5424_s0, %s3341_s30  ;;  %s4686_s29 = scalar_lea.vmem %s5425_s1, %s3345_s25 }
  0x17   : > { %v4357_v4 = vld [vmem:[%s4672_s19] ss:$16 sps:$4 sm:$0xff]   ;;  %3898 = vmatpush3.bf16.msra.mxu1 %v4667_v3  ;;  %v4359_v13 = vld [vmem:[%s4672_s19 + $0x4] ss:$16 sps:$4 sm:$0xff]   ;;  %v4372_v20 = vld [vmem:[%s4672_s19 + $0x8] ss:$16 sps:$4 sm:$0xff]  }
  0x18   : > { %3907 = vmatprep.mubr.bf16.mxu1 %v4357_v4  ;;  %3899 = vmatprep.subr.bf16.mxu1 %v4680_v5  ;;  %v4360_v9 = vld [vmem:[%s4672_s19 + $0x20] ss:$16 sps:$4 sm:$0xff]   ;;  %v4362_v16 = vld [vmem:[%s4672_s19 + $0x24] ss:$16 sps:$4 sm:$0xff]   ;;  %v4374_v22 = vld [vmem:[%s4672_s19 + $0x28] ss:$16 sps:$4 sm:$0xff]  }
  0x19   : > { %v4363_v10 = vld [vmem:[%s4672_s19 + $0x40] ss:$16 sps:$4 sm:$0xff]   ;;  %v4369_v17 = vld [vmem:[%s4672_s19 + $0x44] ss:$16 sps:$4 sm:$0xff]   ;;  %v4376_v23 = vld [vmem:[%s4672_s19 + $0x48] ss:$16 sps:$4 sm:$0xff]   ;;  %4032 = vmatpush3.bf16.msra.mxu0 %v4396_v40 }
  0x1a   : > { %v4365_v11 = vld [vmem:[%s4672_s19 + $0x60] ss:$16 sps:$4 sm:$0xff]   ;;  %v4370_v18 = vld [vmem:[%s4672_s19 + $0x64] ss:$16 sps:$4 sm:$0xff]   ;;  %v4378_v24 = vld [vmem:[%s4672_s19 + $0x68] ss:$16 sps:$4 sm:$0xff]   ;;  %4033 = vmatprep.subr.bf16.mxu0 %v4398_v42 }
  0x1b   : > { %3900 = vmatpush3.bf16.msra.mxu1 %v4680_v5  ;;  %v4367_v12 = vld [vmem:[%s4686_s29] ss:$16 sps:$4 sm:$0xff]   ;;  %v4371_v19 = vld [vmem:[%s4686_s29 + $0x4] ss:$16 sps:$4 sm:$0xff]   ;;  %v4380_v25 = vld [vmem:[%s4686_s29 + $0x8] ss:$16 sps:$4 sm:$0xff]  }
  0x1c   : > { %3901 = vmatprep.subr.bf16.mxu1 %v4692_v6  ;;  %v4382_v26 = vld [vmem:[%s4672_s19 + $0xc] ss:$16 sps:$4 sm:$0xff]  }
  0x1d   : > { %v4383_v27 = vld [vmem:[%s4672_s19 + $0x2c] ss:$16 sps:$4 sm:$0xff]   ;;  %4034 = vmatpush3.bf16.msra.mxu0 %v4398_v42 }
  0x1e   : > { %v4384_v28 = vld [vmem:[%s4672_s19 + $0x4c] ss:$16 sps:$4 sm:$0xff]   ;;  %4035 = vmatprep.subr.bf16.mxu0 %v4399_v43 }
  0x1f   : > { %3902 = vmatpush3.bf16.msra.mxu1 %v4692_v6  ;;  %v4385_v29 = vld [vmem:[%s4672_s19 + $0x6c] ss:$16 sps:$4 sm:$0xff]  }
  0x20   : > { %3903 = vmatprep.subr.bf16.mxu1 %v4699_v7  ;;  %v4386_v30 = vld [vmem:[%s4686_s29 + $0xc] ss:$16 sps:$4 sm:$0xff]  }
  0x21   : > { %4036 = vmatpush3.bf16.msra.mxu0 %v4399_v43 }
  0x22   : > { %4037 = vmatprep.subr.bf16.mxu0 %v4400_v44 }
  0x23   : > { %3904 = vmatpush3.bf16.msra.mxu1 %v4699_v7 }
  0x24   : > { %3905 = vmatprep.subr.bf16.mxu1 %v4705_v8 }
  0x25   : > { %4038 = vmatpush3.bf16.msra.mxu0 %v4400_v44 }
  0x26   : > { %4039 = vmatprep.subr.bf16.mxu0 %v4401_v45 }
  0x27   : > { %3906 = vmatpush3.bf16.msra.mxu1 %v4705_v8 }
  0x28   : > { %3919 = vmatprep.subr.bf16.mxu1 %v4639_v0 }
  0x29   : > { %4040 = vmatpush3.bf16.msra.mxu0 %v4401_v45 }
  0x2a   : > { %3908 = vmatmul.mubr.bf16.vlgmr.msra.gmra.mrb[0].mxu1 %v4360_v9  ;;  %4041 = vmatprep.subr.bf16.mxu0 %v4402_v46 }
  0x2b   : > { %3920 = vmatpush3.bf16.msra.mxu1 %v4639_v0  ;;  %3911 = vmatprep.mubr.bf16.mxu1 %v4363_v10 }
  0x2c   : > { %3921 = vmatprep.subr.bf16.mxu1 %v4646_v1 }
  0x2d   : > { %4042 = vmatpush3.bf16.msra.mxu0 %v4402_v46 }
  0x2e   : > { %4051 = vmatprep.subr.bf16.mxu0 %v4837_v47 }
  0x2f   : > { %3922 = vmatpush3.bf16.msra.mxu1 %v4646_v1 }
  0x30   : > { %3923 = vmatprep.subr.bf16.mxu1 %v4657_v2 }
  0x32   : > { %3912 = vmatmul.mubr.bf16.gmra.mrb[4].mxu1 %v4365_v11 }
  0x33   : > { %3924 = vmatpush3.bf16.msra.mxu1 %v4657_v2  ;;  %3915 = vmatprep.mubr.bf16.mxu1 %v4367_v12 }
  0x34   : > { %3925 = vmatprep.subr.bf16.mxu1 %v4667_v3 }
  0x37   : > { %3926 = vmatpush3.bf16.msra.mxu1 %v4667_v3 }
  0x38   : > { %3927 = vmatprep.subr.bf16.mxu1 %v4680_v5 }
  0x3a   : > { %3916 = vmatmul.mubr.bf16.gmra.mrb[8].mxu1 %v4723_v15 }
  0x3b   : > { %3928 = vmatpush3.bf16.msra.mxu1 %v4680_v5  ;;  %3935 = vmatprep.mubr.bf16.mxu1 %v4359_v13 }
  0x3c   : > { %3929 = vmatprep.subr.bf16.mxu1 %v4692_v6 }
  0x3f   : > { %3930 = vmatpush3.bf16.msra.mxu1 %v4692_v6 }
  0x40   : > { %3931 = vmatprep.subr.bf16.mxu1 %v4699_v7 }
  0x43   : > { %3932 = vmatpush3.bf16.msra.mxu1 %v4699_v7 }
  0x44   : > { %3933 = vmatprep.subr.bf16.mxu1 %v4705_v8 }
  0x47   : > { %3934 = vmatpush3.bf16.msra.mxu1 %v4705_v8 }
  0x48   : > { %3947 = vmatprep.subr.bf16.mxu1 %v4639_v0 }
  0x4a   : > { %3936 = vmatmul.mubr.bf16.vlgmr.msra.gmra.mrb[12].mxu1 %v4362_v16 }
  0x4b   : > { %3948 = vmatpush3.bf16.msra.mxu1 %v4639_v0  ;;  %3939 = vmatprep.mubr.bf16.mxu1 %v4369_v17 }
  0x4c   : > { %3949 = vmatprep.subr.bf16.mxu1 %v4646_v1 }
  0x4f   : > { %3950 = vmatpush3.bf16.msra.mxu1 %v4646_v1 }
  0x50   : > { %3951 = vmatprep.subr.bf16.mxu1 %v4657_v2 }
  0x52   : > { %3940 = vmatmul.mubr.bf16.gmra.mrb[16].mxu1 %v4370_v18 }
  0x53   : > { %3952 = vmatpush3.bf16.msra.mxu1 %v4657_v2  ;;  %3943 = vmatprep.mubr.bf16.mxu1 %v4371_v19 }
  0x54   : > { %3953 = vmatprep.subr.bf16.mxu1 %v4667_v3 }
  0x57   : > { %3954 = vmatpush3.bf16.msra.mxu1 %v4667_v3 }
  0x58   : > { %3955 = vmatprep.subr.bf16.mxu1 %v4680_v5 }
  0x5a   : > { %3944 = vmatmul.mubr.bf16.gmra.mrb[20].mxu1 %v4747_v21 }
  0x5b   : > { %3956 = vmatpush3.bf16.msra.mxu1 %v4680_v5  ;;  %3963 = vmatprep.mubr.bf16.mxu1 %v4372_v20 }
  0x5c   : > { %3957 = vmatprep.subr.bf16.mxu1 %v4692_v6 }
  0x5f   : > { %3958 = vmatpush3.bf16.msra.mxu1 %v4692_v6 }
  0x60   : > { %3959 = vmatprep.subr.bf16.mxu1 %v4699_v7 }
  0x63   : > { %3960 = vmatpush3.bf16.msra.mxu1 %v4699_v7 }
  0x64   : > { %3961 = vmatprep.subr.bf16.mxu1 %v4705_v8 }
  0x67   : > { %3962 = vmatpush3.bf16.msra.mxu1 %v4705_v8 }
  0x68   : > { %3975 = vmatprep.subr.bf16.mxu1 %v4639_v0 }
  0x6a   : > { %3964 = vmatmul.mubr.bf16.vlgmr.msra.gmra.mrb[24].mxu1 %v4374_v22 }
  0x6b   : > { %3976 = vmatpush3.bf16.msra.mxu1 %v4639_v0  ;;  %3967 = vmatprep.mubr.bf16.mxu1 %v4376_v23 }
  0x6c   : > { %3977 = vmatprep.subr.bf16.mxu1 %v4646_v1 }
  0x6f   : > { %3978 = vmatpush3.bf16.msra.mxu1 %v4646_v1 }
  0x70   : > { %3979 = vmatprep.subr.bf16.mxu1 %v4657_v2 }
  0x72   : > { %3968 = vmatmul.mubr.bf16.gmra.mrb[28].mxu1 %v4378_v24 }
  0x73   : > { %3980 = vmatpush3.bf16.msra.mxu1 %v4657_v2  ;;  %3971 = vmatprep.mubr.bf16.mxu1 %v4380_v25 }
  0x74   : > { %3981 = vmatprep.subr.bf16.mxu1 %v4667_v3 }
  0x77   : > { %3982 = vmatpush3.bf16.msra.mxu1 %v4667_v3 }
  0x78   : > { %3983 = vmatprep.subr.bf16.mxu1 %v4680_v5 }
  0x7a   : > { %3972 = vmatmul.mubr.bf16.gmra.mrb[32].mxu1 %v4723_v15 }
  0x7b   : > { %3984 = vmatpush3.bf16.msra.mxu1 %v4680_v5  ;;  %3991 = vmatprep.mubr.bf16.mxu1 %v4382_v26 }
  0x7c   : > { %3985 = vmatprep.subr.bf16.mxu1 %v4692_v6 }
  0x7f   : > { %3986 = vmatpush3.bf16.msra.mxu1 %v4692_v6 }
  0x80   : > { %3987 = vmatprep.subr.bf16.mxu1 %v4699_v7 }
  0x83   : > { %3988 = vmatpush3.bf16.msra.mxu1 %v4699_v7 }
  0x84   : > { %3989 = vmatprep.subr.bf16.mxu1 %v4705_v8 }
  0x87   : > { %3990 = vmatpush3.bf16.msra.mxu1 %v4705_v8 }
  0x88   : > { %4003 = vmatprep.subr.bf16.mxu1 %v4387_v31 }
  0x8a   : > { %3992 = vmatmul.mubr.bf16.vlgmr.msra.gmra.mrb[36].mxu1 %v4383_v27 }
  0x8b   : > { %3995 = vmatprep.mubr.bf16.mxu1 %v4384_v28  ;;  %4004 = vmatpush3.bf16.msra.mxu1 %v4387_v31 }
  0x8c   : > { %4005 = vmatprep.subr.bf16.mxu1 %v4388_v32 }
  0x8f   : > { %4006 = vmatpush3.bf16.msra.mxu1 %v4388_v32 }
  0x90   : > { %4007 = vmatprep.subr.bf16.mxu1 %v4389_v33 }
  0x92   : > { %3996 = vmatmul.mubr.bf16.gmra.mrb[40].mxu1 %v4385_v29 }
  0x93   : > { %3999 = vmatprep.mubr.bf16.mxu1 %v4386_v30  ;;  %4008 = vmatpush3.bf16.msra.mxu1 %v4389_v33 }
  0x94   : > { %4009 = vmatprep.subr.bf16.mxu1 %v4390_v34 }
  0x97   : > { %4010 = vmatpush3.bf16.msra.mxu1 %v4390_v34 }
  0x98   : > { %4011 = vmatprep.subr.bf16.mxu1 %v4391_v35 }
  0x9a   : > { %4000 = vmatmul.mubr.bf16.gmra.mrb[44].mxu1 %v4747_v21 }
  0x9b   : > { %4012 = vmatpush3.bf16.msra.mxu1 %v4391_v35 }
  0x9c   : > { %4013 = vmatprep.subr.bf16.mxu1 %v4393_v37 }
  0x9f   : > { %4014 = vmatpush3.bf16.msra.mxu1 %v4393_v37 }
  0xa0   : > { %4015 = vmatprep.subr.bf16.mxu1 %v4395_v39 }
  0xa3   : > { %4016 = vmatpush3.bf16.msra.mxu1 %v4395_v39 }
  0xa4   : > { %4017 = vmatprep.subr.bf16.mxu1 %v4397_v41 }
  0xa7   : > { %4018 = vmatpush3.bf16.msra.mxu1 %v4397_v41 }
  0xfd   : > { %v3909_v49 = vpop.f32.mrb[0].mxu1 }
  0xfe   : > { %v664_v50 = vadd.f32 %v3909_v49, %v4843_v48  ;;  %v657_v51 = vpop.f32.mrb[1].mxu1 }
  0xff   : > { %v3910_v52 = vpop.f32.mrb[2].mxu1 }
 0x100   : > { %v701_v53 = vmax.f32 %v664_v50, 0.0  ;;  %v667_v54 = vadd.f32 %v3910_v52, %v4843_v48  ;;  %v659_v55 = vpop.f32.mrb[3].mxu1 }
 0x102   : > { %v702_v56 = vmax.f32 %v667_v54, 0.0 }
 0x104   : > { %v710_v57 = vpack.c.bf16 %v702_v56, %v701_v53 }
 0x105   : > { %v3913_v58 = vpop.f32.mrb[4].mxu1 }
 0x106   : > { %v680_v59 = vadd.f32 %v3913_v58, %v4843_v48  ;;  %v671_v60 = vpop.f32.mrb[5].mxu1  ;;  %v1717_v2 = vshll.u32 %v710_v57, 16  ;;  %v1715_v11 = vshrl.u32 %v710_v57, 16 }
 0x107   : > { %v672_v61 = vadd.f32 %v4843_v48, %v671_v60  ;;  %v3914_v62 = vpop.f32.mrb[6].mxu1 }
 0x108   : > { %v705_v63 = vmax.f32 %v680_v59, 0.0  ;;  %v683_v0 = vadd.f32 %v3914_v62, %v4843_v48  ;;  %v674_v1 = vpop.f32.mrb[7].mxu1  ;;  %v1719_v8 = vrot.slane %v1717_v2, 1 }
 0x109   : > { %v703_v3 = vmax.f32 %v672_v61, 0.0  ;;  %v675_v4 = vadd.f32 %v4843_v48, %v674_v1 }
 0x10a   : > { %v706_v5 = vmax.f32 %v683_v0, 0.0  ;;  %v1720_v26 = vor.u32 %v1719_v8, %v1715_v11 }
 0x10b   : > { %v704_v6 = vmax.f32 %v675_v4, 0.0 }
 0x10c   : > { %v712_v7 = vpack.c.bf16 %v706_v5, %v705_v63 }
 0x10d   : > { %v711_v9 = vpack.c.bf16 %v704_v6, %v703_v3  ;;  %v3917_v10 = vpop.f32.mrb[8].mxu1 }
 0x10e   : > { %v696_v12 = vadd.f32 %v3917_v10, %v4843_v48  ;;  %v687_v13 = vpop.f32.mrb[9].mxu1  ;;  %v1730_v14 = vshll.u32 %v712_v7, 16  ;;  %v1734_v32 = vshrl.u32 %v712_v7, 16 }
 0x10f   : > { %v1722_v16 = vshll.u32 %v711_v9, 16  ;;  %v1726_v17 = vshrl.u32 %v711_v9, 16  ;;  %v688_v18 = vadd.f32 %v4843_v48, %v687_v13  ;;  %v3918_v19 = vpop.f32.mrb[10].mxu1 }
 0x110   : > { %v709_v20 = vmax.f32 %v696_v12, 0.0  ;;  %v690_v22 = vpop.f32.mrb[11].mxu1  ;;  %v1732_v28 = vrot.slane %v1730_v14, 1 }
 0x111   : > { %v1724_v23 = vrot.slane %v1722_v16, 1  ;;  %v707_v24 = vmax.f32 %v688_v18, 0.0  ;;  %v691_v25 = vadd.f32 %v4843_v48, %v690_v22 }
 0x112   : > { %v714_v27 = vpack.c.bf16 %v709_v20, %v709_v20  ;;  %v1736_v40 = vor.u32 %v1734_v32, %v1732_v28 }
 0x113   : > { %v1728_v29 = vor.u32 %v1726_v17, %v1724_v23  ;;  %v708_v30 = vmax.f32 %v691_v25, 0.0  ;;  %v4855_v31 = vsel %vm1114_vm0, %v1720_v26, %v1724_v23 }
 0x114   : > { %v1746_v33 = vshll.u32 %v714_v27, 16 }
 0x115   : > { %v713_v34 = vpack.c.bf16 %v708_v30, %v707_v24  ;;  %v4858_v35 = vsel %vm1114_vm0, %v1728_v29, %v1732_v28 }
 0x116   : > { %v1748_v38 = vrot.slane %v1746_v33, 1 }
 0x117   : > { %v1738_v36 = vshll.u32 %v713_v34, 16  ;;  %v1742_v37 = vshrl.u32 %v713_v34, 16 }
 0x119   : > { %v1740_v39 = vrot.slane %v1738_v36, 1 }
 0x11b   : > { %v4861_v41 = vsel %vm1114_vm0, %v1736_v40, %v1740_v39  ;;  %v1744_v42 = vor.u32 %v1742_v37, %v1740_v39 }
 0x11d   : > { %v3937_v43 = vpop.f32.mrb[12].mxu1  ;;  %v4864_v44 = vsel %vm1114_vm0, %v1744_v42, %v1748_v38 }
 0x11e   : > { %v779_v45 = vadd.f32 %v3937_v43, %v4843_v48  ;;  %v772_v46 = vpop.f32.mrb[13].mxu1 }
 0x11f   : > { %v3938_v49 = vpop.f32.mrb[14].mxu1 }
 0x120   : > { %v816_v50 = vmax.f32 %v779_v45, 0.0  ;;  %v782_v51 = vadd.f32 %v3938_v49, %v4843_v48  ;;  %v774_v52 = vpop.f32.mrb[15].mxu1 }
 0x122   : > { %v817_v53 = vmax.f32 %v782_v51, 0.0 }
 0x124   : > { %v4868_v54 = vpack.c.bf16 %v817_v53, %v816_v50 }
 0x125   : > { %v3941_v55 = vpop.f32.mrb[16].mxu1 }
 0x126   : > { %v795_v56 = vadd.f32 %v3941_v55, %v4843_v48  ;;  %v786_v57 = vpop.f32.mrb[17].mxu1  ;;  %v1895_v63 = vshll.u32 %v4868_v54, 16  ;;  %v1893_v8 = vshrl.u32 %v4868_v54, 16 }
 0x127   : > { %v787_v58 = vadd.f32 %v4843_v48, %v786_v57  ;;  %v3942_v59 = vpop.f32.mrb[18].mxu1 }
 0x128   : > { %v820_v60 = vmax.f32 %v795_v56, 0.0  ;;  %v798_v61 = vadd.f32 %v3942_v59, %v4843_v48  ;;  %v789_v62 = vpop.f32.mrb[19].mxu1  ;;  %v1897_v5 = vrot.slane %v1895_v63, 1 }
 0x129   : > { %v818_v0 = vmax.f32 %v787_v58, 0.0  ;;  %v790_v1 = vadd.f32 %v4843_v48, %v789_v62 }
 0x12a   : > { %v821_v2 = vmax.f32 %v798_v61, 0.0  ;;  %v1898_v22 = vor.u32 %v1897_v5, %v1893_v8 }
 0x12b   : > { %v819_v3 = vmax.f32 %v790_v1, 0.0 }
 0x12c   : > { %v4875_v4 = vpack.c.bf16 %v821_v2, %v820_v60 }
 0x12d   : > { %v4877_v6 = vpack.c.bf16 %v819_v3, %v818_v0  ;;  %v3945_v7 = vpop.f32.mrb[20].mxu1 }
 0x12e   : > { %v811_v9 = vadd.f32 %v3945_v7, %v4843_v48  ;;  %v802_v10 = vpop.f32.mrb[21].mxu1  ;;  %v1908_v11 = vshll.u32 %v4875_v4, 16  ;;  %v1912_v29 = vshrl.u32 %v4875_v4, 16 }
 0x12f   : > { %v1904_v12 = vshrl.u32 %v4877_v6, 16  ;;  %v803_v13 = vadd.f32 %v4843_v48, %v802_v10  ;;  %v3946_v14 = vpop.f32.mrb[22].mxu1  ;;  %v1900_v16 = vshll.u32 %v4877_v6, 16 }
 0x130   : > { %v824_v17 = vmax.f32 %v811_v9, 0.0  ;;  %v805_v18 = vpop.f32.mrb[23].mxu1  ;;  %v1910_v25 = vrot.slane %v1908_v11, 1 }
 0x131   : > { %v822_v19 = vmax.f32 %v803_v13, 0.0  ;;  %v806_v20 = vadd.f32 %v4843_v48, %v805_v18  ;;  %v1902_v23 = vrot.slane %v1900_v16, 1 }
 0x132   : > { %v829_v24 = vpack.c.bf16 %v824_v17, %v824_v17  ;;  %v1914_v38 = vor.u32 %v1912_v29, %v1910_v25 }
 0x133   : > { %v823_v26 = vmax.f32 %v806_v20, 0.0  ;;  %v4887_v27 = vsel %vm1114_vm0, %v1898_v22, %v1902_v23  ;;  %v1906_v28 = vor.u32 %v1904_v12, %v1902_v23 }
 0x134   : > { %v1924_v30 = vshll.u32 %v829_v24, 16 }
 0x135   : > { %v4890_v32 = vpack.c.bf16 %v823_v26, %v822_v19  ;;  %v4893_v33 = vsel %vm1114_vm0, %v1906_v28, %v1910_v25 }
 0x136   : > { %v1926_v37 = vrot.slane %v1924_v30, 1 }
 0x137   : > { %v1920_v34 = vshrl.u32 %v4890_v32, 16  ;;  %v1916_v36 = vshll.u32 %v4890_v32, 16 }
 0x139   : > { %v1918_v39 = vrot.slane %v1916_v36, 1 }
 0x13b   : > { %v4898_v40 = vsel %vm1114_vm0, %v1914_v38, %v1918_v39  ;;  %v1922_v42 = vor.u32 %v1920_v34, %v1918_v39 }
 0x13d   : > { %v3965_v43 = vpop.f32.mrb[24].mxu1  ;;  %v4901_v45 = vsel %vm1114_vm0, %v1922_v42, %v1926_v37 }
 0x13e   : > { %v907_v46 = vadd.f32 %v3965_v43, %v4843_v48  ;;  %v898_v49 = vpop.f32.mrb[25].mxu1 }
 0x13f   : > { %v899_v50 = vadd.f32 %v4843_v48, %v898_v49  ;;  %v3966_v51 = vpop.f32.mrb[26].mxu1 }
 0x140   : > { %v946_v52 = vmax.f32 %v907_v46, 0.0  ;;  %v910_v53 = vadd.f32 %v3966_v51, %v4843_v48  ;;  %v901_v55 = vpop.f32.mrb[27].mxu1 }
 0x141   : > { %v902_v56 = vadd.f32 %v4843_v48, %v901_v55  ;;  %v944_v58 = vmax.f32 %v899_v50, 0.0 }
 0x142   : > { %v947_v57 = vmax.f32 %v910_v53, 0.0 }
 0x143   : > { %v945_v59 = vmax.f32 %v902_v56, 0.0 }
 0x144   : > { %v956_v60 = vpack.c.bf16 %v947_v57, %v946_v52 }
 0x145   : > { %v955_v61 = vpack.c.bf16 %v945_v59, %v944_v58  ;;  %v3969_v62 = vpop.f32.mrb[28].mxu1 }
 0x146   : > { %v923_v63 = vadd.f32 %v3969_v62, %v4843_v48  ;;  %v914_v0 = vpop.f32.mrb[29].mxu1  ;;  %v1123_v1 = vshll.u32 %v956_v60, 16  ;;  %v1127_v24 = vshrl.u32 %v956_v60, 16 }
 0x147   : > { %v1118_v2 = vshll.u32 %v955_v61, 16  ;;  %v915_v3 = vadd.f32 %v4843_v48, %v914_v0  ;;  %v3970_v5 = vpop.f32.mrb[30].mxu1  ;;  %v1116_v10 = vshrl.u32 %v955_v61, 16 }
 0x148   : > { %v950_v7 = vmax.f32 %v923_v63, 0.0  ;;  %v926_v8 = vadd.f32 %v3970_v5, %v4843_v48  ;;  %v917_v9 = vpop.f32.mrb[31].mxu1  ;;  %v1125_v16 = vrot.slane %v1123_v1, 1 }
 0x149   : > { %v1120_v11 = vrot.slane %v1118_v2, 1  ;;  %v948_v12 = vmax.f32 %v915_v3, 0.0  ;;  %v918_v13 = vadd.f32 %v4843_v48, %v917_v9 }
 0x14a   : > { %v951_v14 = vmax.f32 %v926_v8, 0.0  ;;  %v1129_v39 = vor.u32 %v1127_v24, %v1125_v16  ;;  %v4404_v24 = vld [vmem:[%s5428_s4 + $0x88] sm:$0xff]  }
 0x14b   : > { %v949_v17 = vmax.f32 %v918_v13, 0.0  ;;  %v1121_v18 = vor.u32 %v1120_v11, %v1116_v10 }
 0x14c   : > { %v958_v19 = vpack.c.bf16 %v951_v14, %v950_v7 }
 0x14d   : > { %v957_v20 = vpack.c.bf16 %v949_v17, %v948_v12  ;;  %v3973_v22 = vpop.f32.mrb[32].mxu1  ;;  %v1126_v23 = vsel %vm1114_vm0, %v1121_v18, %v1125_v16 }
 0x14e   : > { %v939_v25 = vadd.f32 %v3973_v22, %v4843_v48  ;;  %v930_v26 = vpop.f32.mrb[33].mxu1  ;;  %4019 = vmatprep.mubr.bf16.mxu1 %v1126_v23  ;;  %v1139_v28 = vshll.u32 %v958_v19, 16  ;;  %v1143_v55 = vshrl.u32 %v958_v19, 16 }
 0x14f   : > { %v1131_v29 = vshll.u32 %v957_v20, 16  ;;  %v1135_v30 = vshrl.u32 %v957_v20, 16  ;;  %v931_v34 = vadd.f32 %v4843_v48, %v930_v26  ;;  %v3974_v36 = vpop.f32.mrb[34].mxu1 }
 0x150   : > { %v954_v37 = vmax.f32 %v939_v25, 0.0  ;;  %v933_v38 = vpop.f32.mrb[35].mxu1  ;;  %v1141_v50 = vrot.slane %v1139_v28, 1 }
 0x151   : > { %v1133_v42 = vrot.slane %v1131_v29, 1  ;;  %v952_v43 = vmax.f32 %v931_v34, 0.0  ;;  %v934_v46 = vadd.f32 %v4843_v48, %v933_v38 }
 0x152   : > { %v960_v49 = vpack.c.bf16 %v954_v37, %v954_v37  ;;  %v1145_v63 = vor.u32 %v1143_v55, %v1141_v50 }
 0x153   : > { %v953_v51 = vmax.f32 %v934_v46, 0.0  ;;  %v4916_v52 = vsel %vm1114_vm0, %v1129_v39, %v1133_v42  ;;  %v1137_v53 = vor.u32 %v1135_v30, %v1133_v42 }
 0x154   : > { %4020 = vmatmul.mubr.bf16.vlgmr.msra.gmra.mrb[48].mxu1 %v4916_v52  ;;  %v2212_v56 = vshll.u32 %v960_v49, 16 }
 0x155   : > { %v959_v57 = vpack.c.bf16 %v953_v51, %v952_v43  ;;  %v4920_v58 = vsel %vm1114_vm0, %v1137_v53, %v1141_v50  ;;  %v4405_v43 = vld [vmem:[%s5428_s4 + $0x90] sm:$0xff]  }
 0x156   : > { %4023 = vmatprep.mubr.bf16.mxu1 %v4920_v58  ;;  %v2214_v61 = vrot.slane %v2212_v56, 1 }
 0x157   : > { %v1147_v59 = vshll.u32 %v959_v57, 16  ;;  %v2208_v60 = vshrl.u32 %v959_v57, 16 }
 0x159   : > { %v1149_v62 = vrot.slane %v1147_v59, 1  ;;  %v4406_v59 = vld [vmem:[%s5428_s4 + $0x98] sm:$0xff]  }
 0x15b   : > { %v4924_v0 = vsel %vm1114_vm0, %v1145_v63, %v1149_v62  ;;  %v2210_v1 = vor.u32 %v2208_v60, %v1149_v62 }
 0x15c   : > { %4024 = vmatmul.mubr.bf16.gmra.mrb[52].mxu1 %v4924_v0 }
 0x15d   : > { %v3993_v2 = vpop.f32.mrb[36].mxu1  ;;  %v4928_v3 = vsel %vm1114_vm0, %v2210_v1, %v2214_v61 }
 0x15e   : > { %v1027_v5 = vadd.f32 %v3993_v2, %v4843_v48  ;;  %v1018_v7 = vpop.f32.mrb[37].mxu1 }
 0x15f   : > { %v1019_v8 = vadd.f32 %v4843_v48, %v1018_v7  ;;  %v3994_v9 = vpop.f32.mrb[38].mxu1 }
 0x160   : > { %v1030_v10 = vadd.f32 %v3994_v9, %v4843_v48  ;;  %v1021_v11 = vpop.f32.mrb[39].mxu1  ;;  %v1066_v13 = vmax.f32 %v1027_v5, 0.0 }
 0x161   : > { %v1022_v12 = vadd.f32 %v4843_v48, %v1021_v11  ;;  %v1064_v16 = vmax.f32 %v1019_v8, 0.0  ;;  %v4407_v8 = vld [vmem:[%s5428_s4 + $0xa0] sm:$0xff]  }
 0x162   : > { %v1067_v14 = vmax.f32 %v1030_v10, 0.0 }
 0x163   : > { %v1065_v17 = vmax.f32 %v1022_v12, 0.0  ;;  %v4408_v12 = vld [vmem:[%s5428_s4 + $0xa8] sm:$0xff]  }
 0x164   : > { %v4934_v18 = vpack.c.bf16 %v1067_v14, %v1066_v13 }
 0x165   : > { %v1075_v19 = vpack.c.bf16 %v1065_v17, %v1064_v16  ;;  %v3997_v20 = vpop.f32.mrb[40].mxu1  ;;  %v4409_v17 = vld [vmem:[%s5428_s4 + $0xb0] sm:$0xff]  }
 0x166   : > { %v1043_v22 = vadd.f32 %v3997_v20, %v4843_v48  ;;  %v1034_v23 = vpop.f32.mrb[41].mxu1  ;;  %v1406_v46 = vshll.u32 %v4934_v18, 16 }
 0x167   : > { %v1401_v25 = vshll.u32 %v1075_v19, 16  ;;  %v1035_v26 = vadd.f32 %v4843_v48, %v1034_v23  ;;  %v3998_v28 = vpop.f32.mrb[42].mxu1  ;;  %4043 = vmatprep.mubr.bf16.mxu0 %v1075_v19  ;;  %v1399_v39 = vshrl.u32 %v1075_v19, 16 }
 0x168   : > { %v1070_v29 = vmax.f32 %v1043_v22, 0.0  ;;  %v1046_v30 = vadd.f32 %v3998_v28, %v4843_v48  ;;  %v1037_v34 = vpop.f32.mrb[43].mxu1  ;;  %4044 = vmatmul.mubr.bf16.vlgmr.msra.gmra.mrb[0].mxu0 %v4934_v18  ;;  %v1408_v56 = vrot.slane %v1406_v46, 1  ;;  %v4410_v22 = vld [vmem:[%s5428_s4 + $0xb8] sm:$0xff]  }
 0x169   : > { %v1403_v36 = vrot.slane %v1401_v25, 1  ;;  %v1068_v37 = vmax.f32 %v1035_v26, 0.0  ;;  %v1038_v38 = vadd.f32 %v4843_v48, %v1037_v34  ;;  %4052 = vmatpush3.bf16.msra.mxu0 %v4837_v47  ;;  %v4411_v26 = vld [vmem:[%s5428_s4 + $0xc0] sm:$0xff]  }
 0x16a   : > { %v1071_v42 = vmax.f32 %v1046_v30, 0.0  ;;  %4053 = vmatprep.subr.bf16.mxu0 %v4404_v24 }
 0x16b   : > { %v1069_v49 = vmax.f32 %v1038_v38, 0.0  ;;  %v1404_v51 = vor.u32 %v1403_v36, %v1399_v39 }
 0x16c   : > { %v4949_v50 = vpack.c.bf16 %v1071_v42, %v1070_v29  ;;  %v1410_v29 = vshrl.u32 %v4934_v18, 16 }
 0x16d   : > { %v4951_v53 = vpack.c.bf16 %v1069_v49, %v1068_v37  ;;  %4054 = vmatpush3.bf16.msra.mxu0 %v4404_v24  ;;  %v4001_v55 = vpop.f32.mrb[44].mxu1  ;;  %v1409_v62 = vsel %vm1114_vm0, %v1404_v51, %v1408_v56  ;;  %v4412_v37 = vld [vmem:[%s5428_s4 + $0xc8] sm:$0xff]   ;;  %v4414_v49 = vld [vmem:[%s5428_s4 + $0xd8] sm:$0xff]  }
 0x16e   : > { %4055 = vmatprep.subr.bf16.mxu0 %v4405_v43  ;;  %v1059_v47 = vadd.f32 %v4001_v55, %v4843_v48  ;;  %v1050_v57 = vpop.f32.mrb[45].mxu1  ;;  %v1422_v28 = vshll.u32 %v4949_v50, 16  ;;  %v1412_v34 = vor.u32 %v1410_v29, %v1408_v56  ;;  %v1426_v39 = vshrl.u32 %v4949_v50, 16  ;;  %v4415_v55 = vld [vmem:[%s5428_s4 + $0xe0] sm:$0xff]   ;;  %v4416_v56 = vld [vmem:[%s5428_s4 + $0xe8] sm:$0xff]  }
 0x16f   : > { %4047 = vmatprep.mubr.bf16.mxu0 %v4951_v53  ;;  %v1051_v60 = vadd.f32 %v4843_v48, %v1050_v57  ;;  %v4002_v61 = vpop.f32.mrb[46].mxu1  ;;  %v1414_v23 = vshll.u32 %v4951_v53, 16  ;;  %v1418_v24 = vshrl.u32 %v4951_v53, 16  ;;  %v4419_v57 = vld [vmem:[%s5428_s4 + $0x100] sm:$0xff]  }
 0x170   : > { %4048 = vmatmul.mubr.bf16.gmra.mrb[4].mxu0 %v4949_v50  ;;  %v1074_v63 = vmax.f32 %v1059_v47, 0.0  ;;  %v1053_v1 = vpop.f32.mrb[47].mxu1  ;;  %v1424_v36 = vrot.slane %v1422_v28, 1  ;;  %v4417_v47 = vld [vmem:[%s5428_s4 + $0xf0] sm:$0xff]   ;;  %v4422_v61 = vld [vmem:[%s5428_s4 + $0x118] sm:$0xff]   ;;  %v4468_v29 = vld [vmem:[%s5431_s7 + $0x20] sm:$0xff]  }
 0x171   : > { %4056 = vmatpush3.bf16.msra.mxu0 %v4405_v43  ;;  %4067 = vmatprep.mubr.bf16.mxu0 %v1409_v62  ;;  %v1072_v2 = vmax.f32 %v1051_v60, 0.0  ;;  %v1054_v5 = vadd.f32 %v4843_v48, %v1053_v1  ;;  %v1416_v25 = vrot.slane %v1414_v23, 1  ;;  %v4413_v43 = vld [vmem:[%s5428_s4 + $0xd0] sm:$0xff]   ;;  %v4427_v62 = vld [vmem:[%s5428_s4 + $0x140] sm:$0xff]   ;;  %v4465_v23 = vld [vmem:[%s5431_s7 + $0x58] sm:$0xff]  }
 0x172   : > { %v1080_v7 = vpack.c.bf16 %v1074_v63, %v1074_v63  ;;  %4057 = vmatprep.subr.bf16.mxu0 %v4406_v59  ;;  %v1428_v46 = vor.u32 %v1426_v39, %v1424_v36  ;;  %v4421_v60 = vld [vmem:[%s5428_s4 + $0x110] sm:$0xff]   ;;  %v4428_v63 = vld [vmem:[%s5428_s4 + $0x148] sm:$0xff]   ;;  %v4434_v28 = vld [vmem:[%s5428_s4 + $0x178] sm:$0xff]  }
 0x173   : > { %v1073_v9 = vmax.f32 %v1054_v5, 0.0  ;;  %v1420_v30 = vor.u32 %v1418_v24, %v1416_v25  ;;  %v4992_v38 = vsel %vm1114_vm0, %v1412_v34, %v1416_v25  ;;  %v4429_v1 = vld [vmem:[%s5428_s4 + $0x150] sm:$0xff]   ;;  %v4461_v5 = vld [vmem:[%s5431_s7 + $0x48] sm:$0xff]   ;;  %v4466_v25 = vld [vmem:[%s5431_s7 + $0x18] sm:$0xff]  }
 0x174   : > { %v2359_v10 = vshll.u32 %v1080_v7, 16  ;;  %v4499_v7 = vld [vmem:[%s4672_s19 + $0x24] ss:$16 sps:$4 sm:$0xff]   ;;  %v4470_v39 = vld [vmem:[%s5431_s7 + $0x28] sm:$0xff]  }
 0x175   : > { %4058 = vmatpush3.bf16.msra.mxu0 %v4406_v59  ;;  %v4965_v11 = vpack.c.bf16 %v1073_v9, %v1072_v2  ;;  %v4997_v42 = vsel %vm1114_vm0, %v1420_v30, %v1424_v36  ;;  %v4420_v59 = vld [vmem:[%s5428_s4 + $0x108] sm:$0xff]   ;;  %v4430_v2 = vld [vmem:[%s5428_s4 + $0x158] sm:$0xff]   ;;  %v2607_v9 = vshll.u32 %v4499_v7, 16  ;;  %v4433_v24 = vld [vmem:[%s5428_s4 + $0x170] sm:$0xff]  }
 0x176   : > { %4059 = vmatprep.subr.bf16.mxu0 %v4407_v8  ;;  %v2361_v14 = vrot.slane %v2359_v10, 1  ;;  %v5077_v10 = vld [vmem:[%s4672_s19 + $0x44] ss:$16 sps:$4 sm:$0xff]   ;;  %v4469_v30 = vld [vmem:[%s5431_s7 + $0x68] sm:$0xff]   ;;  %v4501_v36 = vld [vmem:[%s4672_s19 + $0x20] ss:$16 sps:$4 sm:$0xff]  }
 0x177   : > { %v2355_v13 = vshrl.u32 %v4965_v11, 16  ;;  %v1430_v48 = vshll.u32 %v4965_v11, 16  ;;  %v4435_v34 = vld [vmem:[%s5428_s4 + $0x180] sm:$0xff]  }
 0x179   : > { %4060 = vmatpush3.bf16.msra.mxu0 %v4407_v8  ;;  %v1432_v16 = vrot.slane %v1430_v48, 1  ;;  %v2605_v8 = vshrl.u32 %v4499_v7, 16  ;;  %v4477_v7 = vld [vmem:[%s5431_s7 + $0xc8] sm:$0xff]  }
 0x17a   : > { %4061 = vmatprep.subr.bf16.mxu0 %v4408_v12 }
 0x17b   : > { %v2357_v19 = vor.u32 %v2355_v13, %v1432_v16  ;;  %v5007_v51 = vsel %vm1114_vm0, %v1428_v46, %v1432_v16  ;;  %v2609_v13 = vrot.slane %v2607_v9, 1  ;;  %v4463_v16 = vld [vmem:[%s5431_s7 + $0x50] sm:$0xff]   ;;  %v4436_v46 = vld [vmem:[%s5428_s4 + $0x188] sm:$0xff]  }
 0x17d   : > { %4062 = vmatpush3.bf16.msra.mxu0 %v4408_v12  ;;  %v4976_v20 = vsel %vm1114_vm0, %v2357_v19, %v2361_v14  ;;  %v2612_v12 = vshll.u32 %v5077_v10, 16  ;;  %v4462_v14 = vld [vmem:[%s5431_s7 + $0x8] sm:$0xff]  }
 0x17e   : > { %4063 = vmatprep.subr.bf16.mxu0 %v4409_v17 }
 0x17f   : > { %v5084_v48 = vrot.slane %v2612_v12, 1 }
 0x181   : > { %4064 = vmatpush3.bf16.msra.mxu0 %v4409_v17  ;;  %v4432_v17 = vld [vmem:[%s5428_s4 + $0x168] sm:$0xff]  }
 0x182   : > { %4065 = vmatprep.subr.bf16.mxu0 %v4410_v22 }
 0x185   : > { %4066 = vmatpush3.bf16.msra.mxu0 %v4410_v22  ;;  %v4464_v22 = vld [vmem:[%s5431_s7 + $0x10] sm:$0xff]  }
 0x186   : > { %4075 = vmatprep.subr.bf16.mxu0 %v4411_v26 }
 0x188   : > { %4068 = vmatmul.mubr.bf16.vlgmr.msra.gmra.mrb[0].mxu0 %v4992_v38 }
 0x189   : > { %4071 = vmatprep.mubr.bf16.mxu0 %v4997_v42  ;;  %4076 = vmatpush3.bf16.msra.mxu0 %v4411_v26  ;;  %v4467_v26 = vld [vmem:[%s5431_s7 + $0x60] sm:$0xff]  }
 0x18a   : > { %4077 = vmatprep.subr.bf16.mxu0 %v4412_v37 }
 0x18d   : > { %4078 = vmatpush3.bf16.msra.mxu0 %v4412_v37  ;;  %v2595_v37 = vshll.u32 %v4501_v36, 16 }
 0x18e   : > { %4079 = vmatprep.subr.bf16.mxu0 %v4413_v43 }
 0x190   : > { %4072 = vmatmul.mubr.bf16.gmra.mrb[4].mxu0 %v5007_v51 }
 0x191   : > { %4080 = vmatpush3.bf16.msra.mxu0 %v4413_v43  ;;  %4091 = vmatprep.mubr.bf16.mxu0 %v4868_v54  ;;  %v4418_v54 = vld [vmem:[%s5428_s4 + $0xf8] sm:$0xff]   ;;  %v4471_v43 = vld [vmem:[%s5431_s7 + $0x70] sm:$0xff]  }
 0x192   : > { %4081 = vmatprep.subr.bf16.mxu0 %v4414_v49 }
 0x195   : > { %4082 = vmatpush3.bf16.msra.mxu0 %v4414_v49  ;;  %v2593_v49 = vshrl.u32 %v4501_v36, 16 }
 0x196   : > { %4083 = vmatprep.subr.bf16.mxu0 %v4415_v55 }
 0x199   : > { %4084 = vmatpush3.bf16.msra.mxu0 %v4415_v55  ;;  %v2597_v55 = vrot.slane %v2595_v37, 1 }
 0x19a   : > { %4085 = vmatprep.subr.bf16.mxu0 %v4416_v56 }
 0x19d   : > { %4086 = vmatpush3.bf16.msra.mxu0 %v4416_v56  ;;  %v4502_v56 = vld [vmem:[%s4672_s19 + $0x40] ss:$16 sps:$4 sm:$0xff]  }
 0x19e   : > { %4087 = vmatprep.subr.bf16.mxu0 %v4417_v47 }
 0x1a1   : > { %4088 = vmatpush3.bf16.msra.mxu0 %v4417_v47  ;;  %v2600_v47 = vshll.u32 %v4502_v56, 16 }
 0x1a2   : > { %4089 = vmatprep.subr.bf16.mxu0 %v4418_v54 }
 0x1a5   : > { %4090 = vmatpush3.bf16.msra.mxu0 %v4418_v54  ;;  %v4472_v54 = vld [vmem:[%s5431_s7 + $0x30] sm:$0xff]  }
 0x1a6   : > { %4099 = vmatprep.subr.bf16.mxu0 %v4419_v57 }
 0x1a8   : > { %4092 = vmatmul.mubr.bf16.vlgmr.msra.gmra.mrb[0].mxu0 %v4877_v6  ;;  %v4424_v6 = vld [vmem:[%s5428_s4 + $0x128] sm:$0xff]  }
 0x1a9   : > { %4095 = vmatprep.mubr.bf16.mxu0 %v4875_v4  ;;  %4100 = vmatpush3.bf16.msra.mxu0 %v4419_v57  ;;  %v4423_v4 = vld [vmem:[%s5428_s4 + $0x120] sm:$0xff]   ;;  %v4473_v57 = vld [vmem:[%s5431_s7 + $0x78] sm:$0xff]  }
 0x1aa   : > { %4101 = vmatprep.subr.bf16.mxu0 %v4420_v59 }
 0x1ad   : > { %4102 = vmatpush3.bf16.msra.mxu0 %v4420_v59  ;;  %v2648_v59 = vshrl.u32 %v5077_v10, 16  ;;  %v4505_v10 = vld [vmem:[%s4686_s29 + $0x4] ss:$16 sps:$4 sm:$0xff]  }
 0x1ae   : > { %4103 = vmatprep.subr.bf16.mxu0 %v4421_v60  ;;  %v2684_v12 = vshll.u32 %v4505_v10, 16 }
 0x1b0   : > { %4096 = vmatmul.mubr.bf16.gmra.mrb[4].mxu0 %v4890_v32  ;;  %v4425_v32 = vld [vmem:[%s5428_s4 + $0x130] sm:$0xff]  }
 0x1b1   : > { %4104 = vmatpush3.bf16.msra.mxu0 %v4421_v60  ;;  %4115 = vmatprep.mubr.bf16.mxu0 %v4855_v31  ;;  %v4426_v31 = vld [vmem:[%s5428_s4 + $0x138] sm:$0xff]   ;;  %v4503_v60 = vld [vmem:[%s4672_s19 + $0x64] ss:$16 sps:$4 sm:$0xff]  }
 0x1b2   : > { %4105 = vmatprep.subr.bf16.mxu0 %v4422_v61  ;;  %v2680_v9 = vshrl.u32 %v4503_v60, 16 }
 0x1b5   : > { %4106 = vmatpush3.bf16.msra.mxu0 %v4422_v61  ;;  %v2652_v61 = vshll.u32 %v4503_v60, 16 }
 0x1b6   : > { %4107 = vmatprep.subr.bf16.mxu0 %v4423_v4 }
 0x1b9   : > { %4108 = vmatpush3.bf16.msra.mxu0 %v4423_v4  ;;  %v4437_v4 = vld [vmem:[%s5428_s4 + $0x190] sm:$0xff]  }
 0x1ba   : > { %4109 = vmatprep.subr.bf16.mxu0 %v4424_v6 }
 0x1bd   : > { %4110 = vmatpush3.bf16.msra.mxu0 %v4424_v6  ;;  %v2602_v6 = vrot.slane %v2600_v47, 1  ;;  %v4484_v47 = vld [vmem:[%s5431_s7 + $0xa0] sm:$0xff]  }
 0x1be   : > { %4111 = vmatprep.subr.bf16.mxu0 %v4425_v32 }
 0x1c1   : > { %4112 = vmatpush3.bf16.msra.mxu0 %v4425_v32  ;;  %v2598_v32 = vor.u32 %v2597_v55, %v2593_v49  ;;  %v4442_v55 = vld [vmem:[%s5428_s4 + $0x1b8] sm:$0xff]  }
 0x1c2   : > { %4113 = vmatprep.subr.bf16.mxu0 %v4426_v31 }
 0x1c5   : > { %4114 = vmatpush3.bf16.msra.mxu0 %v4426_v31  ;;  %v4475_v31 = vld [vmem:[%s5431_s7 + $0xc0] sm:$0xff]  }
 0x1c6   : > { %4123 = vmatprep.subr.bf16.mxu0 %v4427_v62 }
 0x1c8   : > { %4116 = vmatmul.mubr.bf16.vlgmr.msra.gmra.mrb[0].mxu0 %v4858_v35  ;;  %v4459_v35 = vld [vmem:[%s5431_s7 + $0x40] sm:$0xff]  }
 0x1c9   : > { %4119 = vmatprep.mubr.bf16.mxu0 %v4861_v41  ;;  %4124 = vmatpush3.bf16.msra.mxu0 %v4427_v62  ;;  %v4460_v41 = vld [vmem:[%s5431_s7] sm:$0xff]   ;;  %v2654_v62 = vrot.slane %v2652_v61, 1 }
 0x1ca   : > { %4125 = vmatprep.subr.bf16.mxu0 %v4428_v63  ;;  %3799 = vmatprep.subr.bf16.mxu1 %v4459_v35  ;;  %v2640_v35 = vshrl.u32 %v4502_v56, 16 }
 0x1cb   : > { %3800 = vmatpush3.bf16.msra.mxu1 %v4460_v41  ;;  %v4504_v41 = vld [vmem:[%s4672_s19 + $0x60] ss:$16 sps:$4 sm:$0xff]  }
 0x1cc   : > { %3801 = vmatprep.subr.bf16.mxu1 %v4461_v5  ;;  %v2644_v5 = vshll.u32 %v4504_v41, 16 }
 0x1cd   : > { %4126 = vmatpush3.bf16.msra.mxu0 %v4428_v63  ;;  %v4438_v63 = vld [vmem:[%s5428_s4 + $0x198] sm:$0xff]  }
 0x1ce   : > { %4127 = vmatprep.subr.bf16.mxu0 %v4429_v1 }
 0x1cf   : > { %3802 = vmatpush3.bf16.msra.mxu1 %v4462_v14  ;;  %v2682_v14 = vor.u32 %v2680_v9, %v2654_v62  ;;  %v4488_v9 = vld [vmem:[%s5431_s7 + $0xb0] sm:$0xff]  }
 0x1d0   : > { %4120 = vmatmul.mubr.bf16.gmra.mrb[4].mxu0 %v4864_v44  ;;  %v4431_v44 = vld [vmem:[%s5428_s4 + $0x160] sm:$0xff]   ;;  %3803 = vmatprep.subr.bf16.mxu1 %v4463_v16  ;;  %v2686_v16 = vrot.slane %v2684_v12, 1 }
 0x1d1   : > { %4128 = vmatpush3.bf16.msra.mxu0 %v4429_v1  ;;  %4139 = vmatprep.mubr.bf16.mxu0 %v4887_v27  ;;  %v2610_v27 = vor.u32 %v2609_v13, %v2605_v8  ;;  %v2603_v1 = vsel %vm1114_vm0, %v2598_v32, %v2602_v6  ;;  %v2642_v13 = vor.u32 %v2640_v35, %v2602_v6  ;;  %v4508_v6 = vld [vmem:[%s4672_s19 + $0x4c] ss:$16 sps:$4 sm:$0xff]   ;;  %v4443_v32 = vld [vmem:[%s5428_s4 + $0x1c0] sm:$0xff]  }
 0x1d2   : > { %4129 = vmatprep.subr.bf16.mxu0 %v4430_v2 }
 0x1d3   : > { %v2615_v19 = vsel %vm1114_vm0, %v2610_v27, %v5084_v48  ;;  %3804 = vmatpush3.bf16.msra.mxu1 %v4464_v22  ;;  %v4440_v27 = vld [vmem:[%s5428_s4 + $0x1a8] sm:$0xff]   ;;  %v2672_v22 = vshrl.u32 %v4504_v41, 16 }
 0x1d4   : > { %2976 = vmatprep.mubr.bf16.mxu1 %v2615_v19  ;;  %3805 = vmatprep.subr.bf16.mxu1 %v4465_v23  ;;  %v4480_v19 = vld [vmem:[%s5431_s7 + $0x90] sm:$0xff]   ;;  %v4444_v41 = vld [vmem:[%s5428_s4 + $0x1c8] sm:$0xff]  }
 0x1d5   : > { %4130 = vmatpush3.bf16.msra.mxu0 %v4430_v2  ;;  %v4476_v2 = vld [vmem:[%s5431_s7 + $0x80] sm:$0xff]  }
 0x1d6   : > { %4131 = vmatprep.subr.bf16.mxu0 %v4431_v44  ;;  %v4506_v23 = vld [vmem:[%s4686_s29] ss:$16 sps:$4 sm:$0xff]  }
 0x1d7   : > { %3806 = vmatpush3.bf16.msra.mxu1 %v4466_v25  ;;  %v4481_v25 = vld [vmem:[%s5431_s7 + $0xd8] sm:$0xff]  }
 0x1d8   : > { %3807 = vmatprep.subr.bf16.mxu1 %v4467_v26  ;;  %v2687_v26 = vsel %vm1114_vm0, %v2682_v14, %v2686_v16  ;;  %v4445_v14 = vld [vmem:[%s5428_s4 + $0x1d0] sm:$0xff]  }
 0x1d9   : > { %4132 = vmatpush3.bf16.msra.mxu0 %v4431_v44  ;;  %v4439_v44 = vld [vmem:[%s5428_s4 + $0x1a0] sm:$0xff]  }
 0x1da   : > { %4133 = vmatprep.subr.bf16.mxu0 %v4432_v17 }
 0x1db   : > { %3808 = vmatpush3.bf16.msra.mxu1 %v4468_v29  ;;  %v2716_v29 = vshll.u32 %v4747_v21, 16  ;;  %v4483_v21 = vld [vmem:[%s5431_s7 + $0xe0] sm:$0xff]  }
 0x1dc   : > { %3809 = vmatprep.subr.bf16.mxu1 %v4469_v30  ;;  %v4441_v30 = vld [vmem:[%s5428_s4 + $0x1b0] sm:$0xff]  }
 0x1dd   : > { %4134 = vmatpush3.bf16.msra.mxu0 %v4432_v17 }
 0x1de   : > { %4135 = vmatprep.subr.bf16.mxu0 %v4433_v24 }
 0x1df   : > { %3810 = vmatpush3.bf16.msra.mxu1 %v4470_v39 }
 0x1e0   : > { %3811 = vmatprep.subr.bf16.mxu1 %v4471_v43  ;;  %v5201_v43 = vrot.slane %v2716_v29, 1 }
 0x1e1   : > { %4136 = vmatpush3.bf16.msra.mxu0 %v4433_v24  ;;  %v2676_v24 = vshll.u32 %v4506_v23, 16 }
 0x1e2   : > { %4137 = vmatprep.subr.bf16.mxu0 %v4434_v28 }
 0x1e3   : > { %3812 = vmatpush3.bf16.msra.mxu1 %v4472_v54  ;;  %v2678_v37 = vrot.slane %v2676_v24, 1  ;;  %v2704_v54 = vshrl.u32 %v4506_v23, 16 }
 0x1e4   : > { %3813 = vmatprep.subr.bf16.mxu1 %v4473_v57  ;;  %v2708_v57 = vshll.u32 %v4723_v15, 16  ;;  %v4486_v15 = vld [vmem:[%s5431_s7 + $0xa8] sm:$0xff]  }
 0x1e5   : > { %4138 = vmatpush3.bf16.msra.mxu0 %v4434_v28  ;;  %v2712_v28 = vshrl.u32 %v4505_v10, 16 }
 0x1e6   : > { %4147 = vmatprep.subr.bf16.mxu0 %v4435_v34 }
 0x1e7   : > { %v2714_v39 = vor.u32 %v2712_v28, %v2686_v16  ;;  %v4490_v16 = vld [vmem:[%s5431_s7 + $0xb8] sm:$0xff]  }
 0x1e8   : > { %4140 = vmatmul.mubr.bf16.vlgmr.msra.gmra.mrb[0].mxu0 %v4893_v33  ;;  %v4474_v33 = vld [vmem:[%s5431_s7 + $0x38] sm:$0xff]  }
 0x1e9   : > { %4143 = vmatprep.mubr.bf16.mxu0 %v4898_v40  ;;  %4148 = vmatpush3.bf16.msra.mxu0 %v4435_v34  ;;  %v2650_v40 = vor.u32 %v2648_v59, %v5084_v48  ;;  %v2646_v48 = vrot.slane %v2644_v5, 1  ;;  %v4482_v34 = vld [vmem:[%s5431_s7 + $0x98] sm:$0xff]   ;;  %v4485_v59 = vld [vmem:[%s5431_s7 + $0xe8] sm:$0xff]   ;;  %v2719_v60 = vsel %vm1114_vm0, %v2714_v39, %v5201_v43 }
 0x1ea   : > { %4149 = vmatprep.subr.bf16.mxu0 %v4436_v46  ;;  %3814 = vmatpush3.bf16.msra.mxu1 %v4474_v33  ;;  %v2636_v33 = vshll.u32 %v4508_v6, 16  ;;  %v4510_v5 = vld [vmem:[%s4672_s19 + $0x48] ss:$16 sps:$4 sm:$0xff]  }
 0x1eb   : > { %3839 = vmatprep.subr.bf16.mxu1 %v4475_v31  ;;  %v2655_v8 = vsel %vm1114_vm0, %v2650_v40, %v2654_v62  ;;  %v2647_v17 = vsel %vm1114_vm0, %v2642_v13, %v2646_v48  ;;  %v2674_v36 = vor.u32 %v2672_v22, %v2646_v48  ;;  %v2706_v31 = vor.u32 %v2704_v54, %v2678_v37  ;;  %v4509_v62 = vld [vmem:[%s4672_s19 + $0x28] ss:$16 sps:$4 sm:$0xff]   ;;  %v4511_v48 = vld [vmem:[%s4672_s19 + $0x6c] ss:$16 sps:$4 sm:$0xff]  }
 0x1ec   : > { %v5224_v40 = vrot.slane %v2708_v57, 1  ;;  %v2638_v35 = vrot.slane %v2636_v33, 1  ;;  %v2617_v10 = vshrl.u32 %v4509_v62, 16  ;;  %v2664_v13 = vshrl.u32 %v4508_v6, 16  ;;  %v4446_v22 = vld [vmem:[%s5428_s4 + $0x1d8] sm:$0xff]  }
 0x1ed   : > { %4150 = vmatpush3.bf16.msra.mxu0 %v4436_v46  ;;  %2977 = vmatmul.mubr.bf16.vlgmr.msra.gmra.mrb[56].mxu1 %v2603_v1  ;;  %v4507_v46 = vld [vmem:[%s4672_s19 + $0x2c] ss:$16 sps:$4 sm:$0xff]   ;;  %v2679_v56 = vsel %vm1114_vm0, %v2674_v36, %v2678_v37  ;;  %v4487_v1 = vld [vmem:[%s5431_s7 + $0xf0] sm:$0xff]   ;;  %v2656_v24 = vshrl.u32 %v4510_v5, 16  ;;  %v2696_v29 = vshrl.u32 %v4511_v48, 16  ;;  %v4447_v37 = vld [vmem:[%s5428_s4 + $0x1e0] sm:$0xff]  }
 0x1ee   : > { %4151 = vmatprep.subr.bf16.mxu0 %v4437_v4  ;;  %3840 = vmatpush3.bf16.msra.mxu1 %v4476_v2  ;;  %v2631_v49 = vshll.u32 %v4507_v46, 16  ;;  %v2629_v61 = vshrl.u32 %v4507_v46, 16  ;;  %v4492_v36 = vld [vmem:[%s5430_s6 + $0x8] sm:$0xff]  }
 0x1ef   : > { %2984 = vmatprep.mubr.bf16.mxu1 %v2655_v8  ;;  %3841 = vmatprep.subr.bf16.mxu1 %v4477_v7  ;;  %v2624_v7 = vshll.u32 %v4510_v5, 16  ;;  %v2711_v8 = vsel %vm1114_vm0, %v2706_v31, %v5224_v40 }
 0x1f0   : > { %4144 = vmatmul.mubr.bf16.gmra.mrb[4].mxu0 %v4901_v45  ;;  %v4478_v45 = vld [vmem:[%s5431_s7 + $0x88] sm:$0xff]  }
 0x1f1   : > { %4152 = vmatpush3.bf16.msra.mxu0 %v4437_v4  ;;  %4163 = vmatprep.mubr.bf16.mxu0 %v4934_v18  ;;  %v4479_v18 = vld [vmem:[%s5431_s7 + $0xd0] sm:$0xff]   ;;  %v2633_v4 = vrot.slane %v2631_v49, 1 }
 0x1f2   : > { %4153 = vmatprep.subr.bf16.mxu0 %v4438_v63  ;;  %3842 = vmatpush3.bf16.msra.mxu1 %v4478_v45  ;;  %v4493_v49 = vld [vmem:[%s5430_s6 + $0x10] sm:$0xff]  }
 0x1f3   : > { %3843 = vmatprep.subr.bf16.mxu1 %v4479_v18  ;;  %v2634_v2 = vor.u32 %v2633_v4, %v2629_v61  ;;  %v2668_v18 = vshll.u32 %v4511_v48, 16  ;;  %v4449_v61 = vld [vmem:[%s5428_s4 + $0x1f0] sm:$0xff]  }
 0x1f4   : > { %v4497_v48 = vld [vmem:[%s5430_s6 + $0x30] sm:$0xff]  }
 0x1f5   : > { %4154 = vmatpush3.bf16.msra.mxu0 %v4438_v63  ;;  %2985 = vmatmul.mubr.bf16.gmra.mrb[60].mxu1 %v2647_v17  ;;  %v2619_v63 = vshll.u32 %v4509_v62, 16  ;;  %v2639_v45 = vsel %vm1114_vm0, %v2634_v2, %v2638_v35  ;;  %v2666_v17 = vor.u32 %v2664_v13, %v2638_v35  ;;  %v4452_v35 = vld [vmem:[%s5428_s4 + $0x208] sm:$0xff]  }
 0x1f6   : > { %4155 = vmatprep.subr.bf16.mxu0 %v4439_v44  ;;  %3844 = vmatpush3.bf16.msra.mxu1 %v4480_v19  ;;  %v4491_v19 = vld [vmem:[%s5430_s6] sm:$0xff]   ;;  %v4496_v13 = vld [vmem:[%s5430_s6 + $0x28] sm:$0xff]  }
 0x1f7   : > { %2992 = vmatprep.mubr.bf16.mxu1 %v2687_v26  ;;  %3845 = vmatprep.subr.bf16.mxu1 %v4481_v25  ;;  %v2621_v12 = vrot.slane %v2619_v63, 1  ;;  %v4512_v25 = vld [vmem:[%s4672_s19 + $0x68] ss:$16 sps:$4 sm:$0xff]  }
 0x1f8   : > { %v2660_v26 = vshll.u32 %v4512_v25, 16 }
 0x1f9   : > { %4156 = vmatpush3.bf16.msra.mxu0 %v4439_v44  ;;  %v4489_v44 = vld [vmem:[%s5431_s7 + $0xf8] sm:$0xff]  }
 0x1fa   : > { %4157 = vmatprep.subr.bf16.mxu0 %v4440_v27  ;;  %3846 = vmatpush3.bf16.msra.mxu1 %v4482_v34 }
 0x1fb   : > { %3847 = vmatprep.subr.bf16.mxu1 %v4483_v21  ;;  %v2662_v21 = vrot.slane %v2660_v26, 1 }
 0x1fd   : > { %4158 = vmatpush3.bf16.msra.mxu0 %v4440_v27  ;;  %2993 = vmatmul.mubr.bf16.gmra.mrb[64].mxu1 %v2679_v56  ;;  %v2622_v27 = vor.u32 %v2621_v12, %v2617_v10  ;;  %v2688_v56 = vshrl.u32 %v4512_v25, 16 }
 0x1fe   : > { %4159 = vmatprep.subr.bf16.mxu0 %v4441_v30  ;;  %3848 = vmatpush3.bf16.msra.mxu1 %v4484_v47  ;;  %v4514_v47 = vld [vmem:[%s4686_s29 + $0x8] ss:$16 sps:$4 sm:$0xff]  }
 0x1ff   : > { %3000 = vmatprep.mubr.bf16.mxu1 %v2719_v60  ;;  %3849 = vmatprep.subr.bf16.mxu1 %v4485_v59  ;;  %v2692_v54 = vshll.u32 %v4514_v47, 16  ;;  %v4494_v60 = vld [vmem:[%s5430_s6 + $0x18] sm:$0xff]   ;;  %v2690_v4 = vor.u32 %v2688_v56, %v2662_v21  ;;  %v2720_v62 = vshrl.u32 %v4514_v47, 16 }
 0x201   : > { %4160 = vmatpush3.bf16.msra.mxu0 %v4441_v30  ;;  %v4513_v30 = vld [vmem:[%s4686_s29 + $0xc] ss:$16 sps:$4 sm:$0xff]   ;;  %v2694_v6 = vrot.slane %v2692_v54, 1  ;;  %s3347_s29 = sshll.u32 %s5445_s10, 4 }
 0x202   : > { %4161 = vmatprep.subr.bf16.mxu0 %v4442_v55  ;;  %3850 = vmatpush3.bf16.msra.mxu1 %v4486_v15  ;;  %v2700_v34 = vshll.u32 %v4513_v30, 16  ;;  %v2728_v59 = vshrl.u32 %v4513_v30, 16  ;;  %v4450_v15 = vld [vmem:[%s5428_s4 + $0x1f8] sm:$0xff]   ;;  %s449_s16 = sadd.s32 %s3347_s29, %s5449_s18 }
 0x203   : > { %3851 = vmatprep.subr.bf16.mxu1 %v4487_v1  ;;  %v2695_v31 = vsel %vm1114_vm0, %v2690_v4, %v2694_v6  ;;  %v4451_v1 = vld [vmem:[%s5428_s4 + $0x200] sm:$0xff]   ;;  %v2722_v2 = vor.u32 %v2720_v62, %v2694_v6  ;;  %s3348_s17 = sshll.u32 %s449_s16, 3 }
 0x204   : > { %v2702_v46 = vrot.slane %v2700_v34, 1  ;;  %s5399_s21 = scalar_lea.vmem %s5433_s9, %s3348_s17 }
 0x205   : > { %4162 = vmatpush3.bf16.msra.mxu0 %v4442_v55  ;;  %3001 = vmatmul.mubr.bf16.gmra.mrb[68].mxu1 %v2711_v8 }
 0x206   : > { %4171 = vmatprep.subr.bf16.mxu0 %v4443_v32  ;;  %3852 = vmatpush3.bf16.msra.mxu1 %v4488_v9  ;;  %v2730_v33 = vor.u32 %v2728_v59, %v2702_v46  ;;  %v4453_v9 = vld [vmem:[%s5428_s4 + $0x210] sm:$0xff]  }
 0x207   : > { %3041 = vmatprep.mubr.bf16.mxu1 %v2639_v45  ;;  %3853 = vmatprep.subr.bf16.mxu1 %v4489_v44  ;;  %v4455_v44 = vld [vmem:[%s5428_s4 + $0x220] sm:$0xff]   ;;  %v4458_v45 = vld [vmem:[%s5428_s4 + $0x238] sm:$0xff]  }
 0x208   : > { %4164 = vmatmul.mubr.bf16.vlgmr.msra.gmra.mrb[0].mxu0 %v4951_v53  ;;  %v2626_v53 = vrot.slane %v2624_v7, 1  ;;  %v2735_v63 = vsel %vm1114_vm0, %v2730_v33, %v5201_v43  ;;  %v2727_v43 = vsel %vm1114_vm0, %v2722_v2, %v5224_v40 }
 0x209   : > { %4167 = vmatprep.mubr.bf16.mxu0 %v4949_v50  ;;  %4172 = vmatpush3.bf16.msra.mxu0 %v4443_v32  ;;  %v2670_v50 = vrot.slane %v2668_v18, 1  ;;  %v4495_v32 = vld [vmem:[%s5430_s6 + $0x20] sm:$0xff]  }
 0x20a   : > { %4173 = vmatprep.subr.bf16.mxu0 %v4444_v41  ;;  %3854 = vmatpush3.bf16.msra.mxu1 %v4490_v16  ;;  %v2627_v23 = vsel %vm1114_vm0, %v2622_v27, %v2626_v53 }
 0x20b   : > { %v2671_v28 = vsel %vm1114_vm0, %v2666_v17, %v2670_v50  ;;  %4219 = vmatprep.subr.bf16.mxu1 %v4491_v19  ;;  %v2698_v39 = vor.u32 %v2696_v29, %v2670_v50 }
 0x20d   : > { %4174 = vmatpush3.bf16.msra.mxu0 %v4444_v41  ;;  %3042 = vmatmul.mubr.bf16.vlgmr.msra.gmra.mrb[72].mxu1 %v2627_v23  ;;  %v2703_v57 = vsel %vm1114_vm0, %v2698_v39, %v2702_v46 }
 0x20e   : > { %4175 = vmatprep.subr.bf16.mxu0 %v4445_v14  ;;  %3049 = vmatprep.mubr.bf16.mxu1 %v2671_v28 }
 0x20f   : > { %4220 = vmatpush3.bf16.msra.mxu1 %v4491_v19 }
 0x210   : > { %4168 = vmatmul.mubr.bf16.gmra.mrb[4].mxu0 %v4965_v11  ;;  %v2658_v11 = vor.u32 %v2656_v24, %v2626_v53  ;;  %4221 = vmatprep.subr.bf16.mxu1 %v4492_v36 }
 0x211   : > { %4176 = vmatpush3.bf16.msra.mxu0 %v4445_v14  ;;  %4187 = vmatprep.mubr.bf16.mxu0 %v4916_v52  ;;  %v4448_v52 = vld [vmem:[%s5428_s4 + $0x1e8] sm:$0xff]  }
 0x212   : > { %4177 = vmatprep.subr.bf16.mxu0 %v4446_v22  ;;  %v2663_v55 = vsel %vm1114_vm0, %v2658_v11, %v2662_v21 }
 0x213   : > { %4222 = vmatpush3.bf16.msra.mxu1 %v4492_v36 }
 0x214   : > { %4223 = vmatprep.subr.bf16.mxu1 %v4493_v49 }
 0x215   : > { %4178 = vmatpush3.bf16.msra.mxu0 %v4446_v22  ;;  %3050 = vmatmul.mubr.bf16.gmra.mrb[76].mxu1 %v2663_v55 }
 0x216   : > { %4179 = vmatprep.subr.bf16.mxu0 %v4447_v37  ;;  %3057 = vmatprep.mubr.bf16.mxu1 %v2703_v57 }
 0x217   : > { %4224 = vmatpush3.bf16.msra.mxu1 %v4493_v49 }
 0x218   : > { %4225 = vmatprep.subr.bf16.mxu1 %v4494_v60 }
 0x219   : > { %4180 = vmatpush3.bf16.msra.mxu0 %v4447_v37 }
 0x21a   : > { %4181 = vmatprep.subr.bf16.mxu0 %v4448_v52 }
 0x21b   : > { %4226 = vmatpush3.bf16.msra.mxu1 %v4494_v60 }
 0x21c   : > { %4227 = vmatprep.subr.bf16.mxu1 %v4495_v32 }
 0x21d   : > { %4182 = vmatpush3.bf16.msra.mxu0 %v4448_v52  ;;  %3058 = vmatmul.mubr.bf16.gmra.mrb[80].mxu1 %v2695_v31 }
 0x21e   : > { %4183 = vmatprep.subr.bf16.mxu0 %v4449_v61  ;;  %3065 = vmatprep.mubr.bf16.mxu1 %v2735_v63 }
 0x21f   : > { %4228 = vmatpush3.bf16.msra.mxu1 %v4495_v32 }
 0x220   : > { %4229 = vmatprep.subr.bf16.mxu1 %v4496_v13 }
 0x221   : > { %4184 = vmatpush3.bf16.msra.mxu0 %v4449_v61 }
 0x222   : > { %4185 = vmatprep.subr.bf16.mxu0 %v4450_v15 }
 0x223   : > { %4230 = vmatpush3.bf16.msra.mxu1 %v4496_v13 }
 0x224   : > { %4231 = vmatprep.subr.bf16.mxu1 %v4497_v48 }
 0x225   : > { %4186 = vmatpush3.bf16.msra.mxu0 %v4450_v15  ;;  %3066 = vmatmul.mubr.bf16.gmra.mrb[84].mxu1 %v2727_v43 }
 0x226   : > { %4195 = vmatprep.subr.bf16.mxu0 %v4451_v1 }
 0x227   : > { %v5300_v41 = vpop.f32.mrb[48].mxu1  ;;  %4232 = vmatpush3.bf16.msra.mxu1 %v4497_v48 }
 0x228   : > { %4188 = vmatmul.mubr.bf16.vlgmr.msra.gmra.mrb[0].mxu0 %v4920_v58  ;;  %v5305_v5 = vpop.f32.mrb[49].mxu1  ;;  %v4454_v58 = vld [vmem:[%s5428_s4 + $0x218] sm:$0xff]  }
 0x229   : > { %4191 = vmatprep.mubr.bf16.mxu0 %v4924_v0  ;;  %4196 = vmatpush3.bf16.msra.mxu0 %v4451_v1  ;;  %v5308_v7 = vpop.f32.mrb[50].mxu1 }
 0x22a   : > { %v5310_v8 = vpop.f32.mrb[51].mxu1  ;;  %4197 = vmatprep.subr.bf16.mxu0 %v4452_v35 }
 0x22d   : > { %4198 = vmatpush3.bf16.msra.mxu0 %v4452_v35 }
 0x22e   : > { %4199 = vmatprep.subr.bf16.mxu0 %v4453_v9 }
 0x22f   : > { %v5318_v40 = vpop.f32.mrb[52].mxu1 }
 0x230   : > { %4192 = vmatmul.mubr.bf16.gmra.mrb[4].mxu0 %v4928_v3  ;;  %v5321_v0 = vpop.f32.mrb[53].mxu1  ;;  %v4456_v3 = vld [vmem:[%s5428_s4 + $0x228] sm:$0xff]  }
 0x231   : > { %4200 = vmatpush3.bf16.msra.mxu0 %v4453_v9  ;;  %4211 = vmatprep.mubr.bf16.mxu0 %v4992_v38  ;;  %v5324_v10 = vpop.f32.mrb[54].mxu1  ;;  %v4457_v38 = vld [vmem:[%s5428_s4 + $0x230] sm:$0xff]  }
 0x232   : > { %v5326_v12 = vpop.f32.mrb[55].mxu1  ;;  %4201 = vmatprep.subr.bf16.mxu0 %v4454_v58 }
 0x235   : > { %4202 = vmatpush3.bf16.msra.mxu0 %v4454_v58 }
 0x236   : > { %4203 = vmatprep.subr.bf16.mxu0 %v4455_v44 }
 0x239   : > { %4204 = vmatpush3.bf16.msra.mxu0 %v4455_v44 }
 0x23a   : > { %4205 = vmatprep.subr.bf16.mxu0 %v4456_v3 }
 0x23d   : > { %4206 = vmatpush3.bf16.msra.mxu0 %v4456_v3  ;;  %v3582_v3 = vld [vmem:[%s5429_s5] ss:$0 sm:$0xff] }
 0x23e   : > { %4207 = vmatprep.subr.bf16.mxu0 %v4457_v38 }
 0x241   : > { %4208 = vmatpush3.bf16.msra.mxu0 %v4457_v38 }
 0x242   : > { %4209 = vmatprep.subr.bf16.mxu0 %v4458_v45 }
 0x245   : > { %4210 = vmatpush3.bf16.msra.mxu0 %v4458_v45 }
 0x248   : > { %4212 = vmatmul.mubr.bf16.vlgmr.msra.gmra.mrb[0].mxu0 %v4997_v42  ;;  %v4498_v42 = vld [vmem:[%s5430_s6 + $0x38] sm:$0xff]  }
 0x249   : > { %4215 = vmatprep.mubr.bf16.mxu0 %v5007_v51  ;;  %4233 = vmatprep.subr.bf16.mxu1 %v4498_v42 }
 0x24a   : > { %4234 = vmatpush3.bf16.msra.mxu1 %v4498_v42 }
 0x250   : > { %4216 = vmatmul.mubr.bf16.gmra.mrb[4].mxu0 %v4976_v20 }
 0x2c0   : > { %v3815_v51 = vpop.f32.mrb[56].mxu1 }
 0x2c1   : > { %v3816_v20 = vpop.f32.mrb[57].mxu1 }
 0x2c2   : > { %v5352_v18 = vadd.f32 %v3816_v20, %v3815_v51  ;;  %v3818_v14 = vpop.f32.mrb[58].mxu1 }
 0x2c3   : > { %v3819_v53 = vpop.f32.mrb[59].mxu1 }
 0x2c4   : > { %v5354_v16 = vadd.f32 %v3819_v53, %v3818_v14 }
 0x2c8   : > { %v3821_v27 = vpop.f32.mrb[60].mxu1 }
 0x2c9   : > { %v3822_v17 = vpop.f32.mrb[61].mxu1 }
 0x2ca   : > { %v3823_v50 = vadd.f32 %v3822_v17, %v3821_v27  ;;  %v3824_v19 = vpop.f32.mrb[62].mxu1 }
 0x2cb   : > { %v3825_v22 = vpop.f32.mrb[63].mxu1 }
 0x2cc   : > { %v5356_v23 = vadd.f32 %v3825_v22, %v3824_v19 }
 0x2d0   : > { %v3827_v24 = vpop.f32.mrb[64].mxu1 }
 0x2d1   : > { %v3828_v25 = vpop.f32.mrb[65].mxu1 }
 0x2d2   : > { %v5358_v26 = vadd.f32 %v3828_v25, %v3827_v24  ;;  %v3830_v28 = vpop.f32.mrb[66].mxu1 }
 0x2d3   : > { %v3831_v29 = vpop.f32.mrb[67].mxu1 }
 0x2d4   : > { %v5360_v30 = vadd.f32 %v3831_v29, %v3830_v28 }
 0x2d8   : > { %v3833_v34 = vpop.f32.mrb[68].mxu1 }
 0x2d9   : > { %v3834_v36 = vpop.f32.mrb[69].mxu1 }
 0x2da   : > { %v5362_v37 = vadd.f32 %v3834_v36, %v3833_v34  ;;  %v3836_v11 = vpop.f32.mrb[70].mxu1 }
 0x2db   : > { %v3837_v21 = vpop.f32.mrb[71].mxu1 }
 0x2dc   : > { %v5364_v39 = vadd.f32 %v3837_v21, %v3836_v11 }
 0x2e0   : > { %v3855_v46 = vpop.f32.mrb[72].mxu1 }
 0x2e1   : > { %v3856_v49 = vpop.f32.mrb[73].mxu1 }
 0x2e2   : > { %v5366_v52 = vadd.f32 %v3856_v49, %v3855_v46  ;;  %v3858_v55 = vpop.f32.mrb[74].mxu1 }
 0x2e3   : > { %v3859_v56 = vpop.f32.mrb[75].mxu1 }
 0x2e4   : > { %v3860_v47 = vadd.f32 %v3859_v56, %v3858_v55 }
 0x2e8   : > { %v3861_v54 = vpop.f32.mrb[76].mxu1 }
 0x2e9   : > { %v3862_v57 = vpop.f32.mrb[77].mxu1 }
 0x2ea   : > { %v3863_v59 = vadd.f32 %v3862_v57, %v3861_v54  ;;  %v3864_v60 = vpop.f32.mrb[78].mxu1 }
 0x2eb   : > { %v3865_v61 = vpop.f32.mrb[79].mxu1 }
 0x2ec   : > { %v3866_v4 = vadd.f32 %v3865_v61, %v3864_v60  ;;  %v5368_v6 = vadd.f32 %v3863_v59, %v3823_v50 }
 0x2ee   : > { %v3055_v60 = vadd.f32 %v3866_v4, %v5356_v23 }
 0x2f0   : > { %v3867_v33 = vpop.f32.mrb[80].mxu1 }
 0x2f1   : > { %v3868_v32 = vpop.f32.mrb[81].mxu1 }
 0x2f2   : > { %v3869_v15 = vadd.f32 %v3868_v32, %v3867_v33  ;;  %v3870_v31 = vpop.f32.mrb[82].mxu1 }
 0x2f3   : > { %v3871_v62 = vpop.f32.mrb[83].mxu1 }
 0x2f4   : > { %v3872_v63 = vadd.f32 %v3871_v62, %v3870_v31  ;;  %v3060_v61 = vadd.f32 %v3869_v15, %v5358_v26 }
 0x2f6   : > { %v3063_v33 = vadd.f32 %v3872_v63, %v5360_v30 }
 0x2f8   : > { %v3873_v1 = vpop.f32.mrb[84].mxu1 }
 0x2f9   : > { %v3874_v2 = vpop.f32.mrb[85].mxu1 }
 0x2fa   : > { %v3875_v35 = vadd.f32 %v3874_v2, %v3873_v1  ;;  %v3876_v43 = vpop.f32.mrb[86].mxu1 }
 0x2fb   : > { %v3877_v9 = vpop.f32.mrb[87].mxu1 }
 0x2fc   : > { %v3878_v58 = vadd.f32 %v3877_v9, %v3876_v43  ;;  %v3068_v32 = vadd.f32 %v3875_v35, %v5362_v37 }
 0x2fe   : > { %v3071_v31 = vadd.f32 %v3878_v58, %v5364_v39 }
 0x31b   : > { %v4213_v44 = vpop.f32.mrb[0].mxu0 }
 0x31c   : > { %v4243_v38 = vadd.f32 %v4213_v44, %v5300_v41  ;;  %v2446_v45 = vpop.f32.mrb[1].mxu0 }
 0x31d   : > { %v4244_v13 = vadd.f32 %v2446_v45, %v5305_v5  ;;  %v4214_v48 = vpop.f32.mrb[2].mxu0 }
 0x31e   : > { %v2494_v42 = vadd.f32 %v4243_v38, %v3582_v3  ;;  %v4245_v51 = vadd.f32 %v4214_v48, %v5308_v7  ;;  %v2449_v20 = vpop.f32.mrb[3].mxu0 }
 0x31f   : > { %v2492_v14 = vadd.f32 %v4244_v13, %v3582_v3  ;;  %v4246_v53 = vadd.f32 %v2449_v20, %v5310_v8 }
 0x320   : > { %v2495_v27 = vadd.f32 %v4245_v51, %v3582_v3  ;;  %v2502_v50 = vmax.f32 %v2494_v42, 0.0 }
 0x321   : > { %v2493_v17 = vadd.f32 %v4246_v53, %v3582_v3  ;;  %v2500_v22 = vmax.f32 %v2492_v14, 0.0 }
 0x322   : > { %v2503_v19 = vmax.f32 %v2495_v27, 0.0 }
 0x323   : > { %v2501_v24 = vmax.f32 %v2493_v17, 0.0  ;;  %v4217_v25 = vpop.f32.mrb[4].mxu0 }
 0x324   : > { %v2509_v28 = vpack.c.bf16 %v2503_v19, %v2502_v50  ;;  %v4247_v41 = vadd.f32 %v4217_v25, %v5318_v40  ;;  %v2462_v29 = vpop.f32.mrb[5].mxu0 }
 0x325   : > { %v4248_v5 = vadd.f32 %v2462_v29, %v5321_v0  ;;  %v4218_v34 = vpop.f32.mrb[6].mxu0  ;;  %v2508_v36 = vpack.c.bf16 %v2501_v24, %v2500_v22 }
 0x326   : > { %v2498_v7 = vadd.f32 %v4247_v41, %v3582_v3  ;;  %v4249_v11 = vadd.f32 %v4218_v34, %v5324_v10  ;;  %v2465_v21 = vpop.f32.mrb[7].mxu0  ;;  %v3044_v10 = vadd.f32 %v5366_v52, %v5352_v18  ;;  %v3623_v18 = vld [vmem:[%s5432_s8] ss:$0 sm:$0xff] }
 0x327   : > { %v2496_v8 = vadd.f32 %v4248_v5, %v3582_v3  ;;  %v4250_v46 = vadd.f32 %v2465_v21, %v5326_v12  ;;  %4235 = vmatprep.mubr.bf16.mxu1 %v2508_v36  ;;  %v3047_v12 = vadd.f32 %v3860_v47, %v5354_v16 }
 0x328   : > { %v2499_v49 = vadd.f32 %v4249_v11, %v3582_v3  ;;  %4236 = vmatmul.mubr.bf16.vlgmr.msra.gmra.mrb[88].mxu1 %v2509_v28  ;;  %v2506_v56 = vmax.f32 %v2498_v7, 0.0 }
 0x329   : > { %v2497_v55 = vadd.f32 %v4250_v46, %v3582_v3  ;;  %v2504_v54 = vmax.f32 %v2496_v8, 0.0 }
 0x32a   : > { %v2507_v40 = vmax.f32 %v2499_v49, 0.0 }
 0x32b   : > { %v2505_v0 = vmax.f32 %v2497_v55, 0.0 }
 0x32c   : > { %v2511_v57 = vpack.c.bf16 %v2507_v40, %v2506_v56 }
 0x32d   : > { %v2510_v59 = vpack.c.bf16 %v2505_v0, %v2504_v54 }
 0x32f   : > { %4239 = vmatprep.mubr.bf16.mxu1 %v2510_v59 }
 0x330   : > { %4240 = vmatmul.mubr.bf16.gmra.mrb[92].mxu1 %v2511_v57 }
 0x3fb   : > { %v4237_v62 = vpop.f32.mrb[88].mxu1 }
 0x3fc   : > { %v3165_v16 = vadd.f32 %v4237_v62, %v5368_v6  ;;  %v3156_v23 = vpop.f32.mrb[89].mxu1 }
 0x3fd   : > { %v3157_v26 = vadd.f32 %v3156_v23, %v3044_v10  ;;  %v4238_v52 = vpop.f32.mrb[90].mxu1 }
 0x3fe   : > { %v3196_v30 = vadd.f32 %v3623_v18, %v3165_v16  ;;  %v3168_v47 = vadd.f32 %v4238_v52, %v3055_v60  ;;  %v3159_v37 = vpop.f32.mrb[91].mxu1 }
 0x3ff   : > { %v3194_v39 = vadd.f32 %v3623_v18, %v3157_v26  ;;  %v3160_v4 = vadd.f32 %v3159_v37, %v3047_v12 }
 0x400   : > { %v3204_v15 = vmax.f32 %v3196_v30, 0.0  ;;  %v3197_v63 = vadd.f32 %v3623_v18, %v3168_v47 }
 0x401   : > { %v3202_v6 = vmax.f32 %v3194_v39, 0.0  ;;  %v3195_v1 = vadd.f32 %v3623_v18, %v3160_v4 }
 0x402   : > { %3212 = vst [vmem:[%s5399_s21 + $0x10] sm:$0xff] %v3204_v15  ;;  %v3205_v2 = vmax.f32 %v3197_v63, 0.0 }
 0x403   : > { %3210 = vst [vmem:[%s5399_s21] sm:$0xff] %v3202_v6  ;;  %v3203_v35 = vmax.f32 %v3195_v1, 0.0  ;;  %v4241_v43 = vpop.f32.mrb[92].mxu1 }
 0x404   : > { %3213 = vst [vmem:[%s5399_s21 + $0x18] sm:$0xff] %v3205_v2  ;;  %v3181_v9 = vadd.f32 %v4241_v43, %v3068_v32  ;;  %v3172_v58 = vpop.f32.mrb[93].mxu1 }
 0x405   : > { %3211 = vst [vmem:[%s5399_s21 + $0x8] sm:$0xff] %v3203_v35  ;;  %v3173_v44 = vadd.f32 %v3172_v58, %v3060_v61  ;;  %v4242_v3 = vpop.f32.mrb[94].mxu1 }
 0x406   : > { %v3200_v38 = vadd.f32 %v3623_v18, %v3181_v9  ;;  %v3184_v45 = vadd.f32 %v4242_v3, %v3071_v31  ;;  %v3175_v13 = vpop.f32.mrb[95].mxu1 }
 0x407   : > { %v3198_v48 = vadd.f32 %v3623_v18, %v3173_v44  ;;  %v3176_v42 = vadd.f32 %v3175_v13, %v3063_v33 }
 0x408   : > { %v3208_v51 = vmax.f32 %v3200_v38, 0.0  ;;  %v3201_v20 = vadd.f32 %v3623_v18, %v3184_v45 }
 0x409   : > { %v3206_v14 = vmax.f32 %v3198_v48, 0.0  ;;  %v3199_v53 = vadd.f32 %v3623_v18, %v3176_v42 }
 0x40a   : > { %3216 = vst [vmem:[%s5399_s21 + $0x30] sm:$0xff] %v3208_v51  ;;  %v3209_v27 = vmax.f32 %v3201_v20, 0.0 }
 0x40b   : > { %3214 = vst [vmem:[%s5399_s21 + $0x20] sm:$0xff] %v3206_v14  ;;  %v3207_v17 = vmax.f32 %v3199_v53, 0.0 }
 0x40c   : > { %3217 = vst [vmem:[%s5399_s21 + $0x38] sm:$0xff] %v3209_v27 }
 0x40d   : > { %3215 = vst [vmem:[%s5399_s21 + $0x28] sm:$0xff] %v3207_v17 }
 0x40e PF: > { %s19_s13 = sadd.s32 1, %s4553_s13   ;;  %s5434_s30 = smov %s4545_s11 }
 0x40f   : > { %p16_p9 = scmp.ge.s32.totalorder %s19_s13, 6   ;;  %s5435_s10 = smov %s4549_s12 }
 0x410   : > { %s5436_s11 = smov %s5439_s14  ;;  %s5437_s12 = smov %s5443_s15 }
 0x411   :  { %18 = sbr.rel (!%p16_p9) target bundleno = 3 (0x3), region = 97 }

</bundles_post_ra>
